<compile_context>
chip_gen: v6e
topology: v6e:2x2x1
jax: 0.10.0
libtpu: 0.0.40
codegen_flags: <defaults>
</compile_context>

<pallas_src>
import math

import numpy as np
import jax
import jax.numpy as jnp
from jax import lax
from jax.experimental import pallas as pl
from jax.experimental.pallas import tpu as pltpu

# ----------------------------- config (small, consistent with the module) ---
B = 2
HIDDEN = 32            # hidden_size == C
NUM_HEADS = 4
HEAD_DIM = HIDDEN // NUM_HEADS
W_SP, H_SP, Z_SP = 4, 4, 4
N_TOK = W_SP * H_SP * Z_SP   # input_size == N == W*H*Z
PROJ = 16                    # proj_size


# ----------------------------- Pallas kernel --------------------------------
def danet_kernel(x_ref, w_ref, eft_ref, kvmask_ref, ca_scale_ref, ca_bias_ref,
                 tsa_ref, scram_ref, out_ref):
    """Single invocation: both branches, whole batch.

    x_ref        : (C, B*N)   f32   channel-major tokens, batch folded in lanes
    w_ref        : (6C, C)    bf16  stacked [q_sa;k_sa;v_sa;q_ca;k_ca;v_ca]
    eft_ref      : (N, nh*P)  f32   EF tiled nh times along columns
    kvmask_ref   : (C, nh*P)  f32   1 where head(row) == column block, else 0
    ca_scale_ref : (C, C)     f32   temperature[h] on the head block-diag, 0 off
    ca_bias_ref  : (C, C)     f32   0 on the head block-diag, -1e30 off
    tsa_ref      : (1, nh*P)  f32   temperature2[h] repeated P times per column
    scram_ref    : (r*C, N)   bf16  0/1 matrices realizing torch's SA permute
    out_ref      : (C, B*N)   f32   feat_sum = x_CA + x_SA, channel-major
    """
    c = ca_scale_ref.shape[0]
    n = scram_ref.shape[1]
    bn = x_ref.shape[1]
    nb = bn // n                     # batch elements packed along lanes
    r = scram_ref.shape[0] // c      # N // C

    # Fused qkvv for BOTH branches and the whole batch: one bf16 MXU matmul,
    # f32 accumulation, 128-lane-dense result.
    qkvv = jnp.dot(w_ref[...], x_ref[...].astype(jnp.bfloat16),
                   preferred_element_type=jnp.float32)           # (6C, B*N)

    # Resident constants (hoisted to host, loaded once).
    kvmask = kvmask_ref[...]
    ca_scale = ca_scale_ref[...]
    ca_bias = ca_bias_ref[...]
    eft = eft_ref[...]
    tsa = tsa_ref[...]
    scram = scram_ref[...]

    def rownorm(a):
        # torch F.normalize(x, dim=-1, eps=1e-12) over the token axis (rows)
        ss = jnp.sum(a * a, axis=1, keepdims=True)
        return a * lax.rsqrt(jnp.maximum(ss, 1e-24))

    for b in range(nb):              # tiny unrolled loop over the batch (B=2)
        lo, hi = b * n, (b + 1) * n
        q_sa = qkvv[0 * c:1 * c, lo:hi]
        k_sa = qkvv[1 * c:2 * c, lo:hi]
        v_sa = qkvv[2 * c:3 * c, lo:hi]
        q_ca = qkvv[3 * c:4 * c, lo:hi]
        k_ca = qkvv[4 * c:5 * c, lo:hi]
        v_ca = qkvv[5 * c:6 * c, lo:hi]

        # ---------------- channel attention (heads via resident block mask) -
        qn = rownorm(q_ca)
        kn = rownorm(k_ca)
        gram = lax.dot_general(qn, kn, (((1,), (1,)), ((), ())),
                               preferred_element_type=jnp.float32)   # (C, C)
        sc = gram * ca_scale + ca_bias       # per-head temperature + -inf mask
        m_ca = jnp.max(sc, axis=1, keepdims=True)
        e_ca = jnp.exp(sc - m_ca)
        attn_ca = e_ca / jnp.sum(e_ca, axis=1, keepdims=True)
        x_ca = jnp.dot(attn_ca, v_ca,
                       preferred_element_type=jnp.float32)           # (C, N)

        # ---------------- spatial attention ---------------------------------
        qn_sa = rownorm(q_sa)                                        # (C, N)
        # block-diagonal K / V operands: pre-tiled EF matmul * resident mask
        kb = jnp.dot(k_sa, eft, preferred_element_type=jnp.float32) * kvmask
        vb = jnp.dot(v_sa, eft, preferred_element_type=jnp.float32) * kvmask
        # transpose folded into the matmul (contract the channel axis)
        scores = lax.dot_general(qn_sa, kb, (((0,), (0,)), ((), ())),
                                 preferred_element_type=jnp.float32)  # (N,nh*P)
        scores = scores * tsa
        # per-head softmax over P columns; a global row max is a valid shift
        m_sa = jnp.max(scores, axis=1, keepdims=True)
        e_sa = jnp.exp(scores - m_sa)
        num = lax.dot_general(e_sa, vb, (((1,), (1,)), ((), ())),
                              preferred_element_type=jnp.float32)     # (N, C)
        den = lax.dot_general(e_sa, kvmask, (((1,), (1,)), ((), ())),
                              preferred_element_type=jnp.float32)     # (N, C)
        x_sa_nat = num / den                                          # (N, C)

        # torch-exact (B,nh,N,d).permute(0,3,1,2).reshape(B,N,C) epilogue,
        # emitted channel-major via r small bf16 0/1 permutation matmuls.
        x_sa_bf = x_sa_nat.astype(jnp.bfloat16)
        x_sa = jnp.dot(x_sa_bf[0:c, :], scram[0:c, :],
                       preferred_element_type=jnp.float32)            # (C, N)
        for b2 in range(1, r):
            x_sa = x_sa + jnp.dot(x_sa_bf[b2 * c:(b2 + 1) * c, :],
                                  scram[b2 * c:(b2 + 1) * c, :],
                                  preferred_element_type=jnp.float32)

        out_ref[:, lo:hi] = x_ca + x_sa


# ----------------------------- wrapper ---------------------------------------
def danet_head_pallas(x, w_stack, eft, kvmask, ca_scale, ca_bias, tsa_cols,
                      scram):
    """x: (B, C, W, H, Z) f32 -> (B, C, W, H, Z) f32."""
    b, c, wd, ht, zd = x.shape
    n = wd * ht * zd
    assert c % NUM_HEADS == 0
    assert n % c == 0, "scramble identity requires N % C == 0"

    # channel-major, batch folded into the lane axis: (C, B*N)
    # (one tiny 16 KiB transpose -> lane-dense matmul, DMAs and stores)
    x_cbn = jnp.transpose(x.reshape(b, c, n), (1, 0, 2)).reshape(c, b * n)

    out_cbn = pl.pallas_call(
        danet_kernel,
        out_shape=jax.ShapeDtypeStruct((c, b * n), jnp.float32),
        grid=(1,),                       # whole problem in a single step
        in_specs=[
            pl.BlockSpec((c, b * n), lambda i: (0, 0)),
            pl.BlockSpec(w_stack.shape, lambda i: (0, 0)),
            pl.BlockSpec(eft.shape, lambda i: (0, 0)),
            pl.BlockSpec(kvmask.shape, lambda i: (0, 0)),
            pl.BlockSpec(ca_scale.shape, lambda i: (0, 0)),
            pl.BlockSpec(ca_bias.shape, lambda i: (0, 0)),
            pl.BlockSpec(tsa_cols.shape, lambda i: (0, 0)),
            pl.BlockSpec(scram.shape, lambda i: (0, 0)),
        ],
        out_specs=pl.BlockSpec((c, b * n), lambda i: (0, 0)),
        compiler_params=pltpu.CompilerParams(
            dimension_semantics=("arbitrary",)),
    )(x_cbn, w_stack, eft, kvmask, ca_scale, ca_bias, tsa_cols, scram)

    out = jnp.transpose(out_cbn.reshape(c, b, n), (1, 0, 2))   # tiny transpose
    return out.reshape(b, c, wd, ht, zd)                        # free


# ----------------------------- host-side constant construction --------------
def build_scramble(c, n, nh):
    """0/1 matrices so that sum_b x_sa_nat[b*C:(b+1)*C] @ S_b reproduces the
    torch permute(0,3,1,2).reshape(B,N,C) of the spatial branch, channel-major."""
    d = c // nh
    r = n // c
    s = np.zeros((r * c, n), np.float32)
    for b_ in range(r):
        for ch in range(c):
            h_, dd = divmod(ch, d)
            s[b_ * c + ch, dd * nh * r + h_ * r + b_] = 1.0
    return s


def build_constants(w_sa, w_ca, ef, t_sa, t_ca, c, n, nh, p):
    """Module-init style precomputation of every kernel-resident constant."""
    d = c // nh
    # Only the 6 projections actually used downstream:
    #   SA: q (rows 0:C), k (C:2C), v_SA (3C:4C); CA: q, k, v_CA (2C:3C).
    w_stack = jnp.concatenate(
        [w_sa[0:c], w_sa[c:2 * c], w_sa[3 * c:4 * c],
         w_ca[0:c], w_ca[c:2 * c], w_ca[2 * c:3 * c]], axis=0
    ).astype(jnp.bfloat16)                                        # (6C, C)

    eft = jnp.tile(ef, (1, nh)).astype(jnp.float32)               # (N, nh*P)

    heads = np.arange(c) // d
    kvmask = (heads[:, None] == (np.arange(nh * p)[None, :] // p)
              ).astype(np.float32)                                # (C, nh*P)

    same_head = heads[:, None] == heads[None, :]
    t_ca_np = np.asarray(t_ca, np.float32)
    ca_scale = np.where(same_head, t_ca_np[heads][:, None], 0.0
                        ).astype(np.float32)                      # (C, C)
    ca_bias = np.where(same_head, 0.0, -1e30).astype(np.float32)  # (C, C)

    t_sa_np = np.asarray(t_sa, np.float32)
    tsa_cols = np.repeat(t_sa_np, p).reshape(1, nh * p).astype(np.float32)

    scram = build_scramble(c, n, nh).astype(np.float32)
    return (w_stack, eft, jnp.asarray(kvmask), jnp.asarray(ca_scale),
            jnp.asarray(ca_bias), jnp.asarray(tsa_cols),
            jnp.asarray(scram).astype(jnp.bfloat16))


# ----------------------------- pure-JAX f32 reference ------------------------
def _l2norm_lastdim(x):
    nrm = jnp.sqrt(jnp.sum(x * x, axis=-1, keepdims=True))
    return x / jnp.maximum(nrm, 1e-12)


def danet_head_ref(x, w_sa, w_ca, ef, t_sa, t_ca):
    b, c, wd, ht, zd = x.shape
    n = wd * ht * zd
    nh = NUM_HEADS
    d = c // nh
    xf = jnp.transpose(x.reshape(b, c, n), (0, 2, 1))        # (B, N, C)

    def split(wt):                                           # wt: (4C, C)
        qkvv = xf @ wt.T                                     # (B, N, 4C)
        qkvv = qkvv.reshape(b, n, 4, nh, d).transpose(2, 0, 3, 1, 4)
        return qkvv[0], qkvv[1], qkvv[2], qkvv[3]            # (B, nh, N, d)

    # Spatial attention
    q, k, _, vsa = split(w_sa)
    qT = jnp.swapaxes(q, -2, -1)
    kT = jnp.swapaxes(k, -2, -1)
    vT = jnp.swapaxes(vsa, -2, -1)                           # (B, nh, d, N)
    k_proj = jnp.einsum('bhdn,nk->bhdk', kT, ef)
    v_proj = jnp.einsum('bhdn,nk->bhdk', vT, ef)
    qn = _l2norm_lastdim(qT)
    attn = jnp.swapaxes(qn, -2, -1) @ k_proj * t_sa.reshape(1, nh, 1, 1)
    attn = jax.nn.softmax(attn, axis=-1)
    x_sa = attn @ jnp.swapaxes(v_proj, -2, -1)               # (B, nh, N, d)
    x_sa = jnp.transpose(x_sa, (0, 3, 1, 2)).reshape(b, n, c)

    # Channel attention
    q, k, vca, _ = split(w_ca)
    qT = jnp.swapaxes(q, -2, -1)
    kT = jnp.swapaxes(k, -2, -1)
    vT = jnp.swapaxes(vca, -2, -1)
    qn = _l2norm_lastdim(qT)
    kn = _l2norm_lastdim(kT)
    attn = qn @ jnp.swapaxes(kn, -2, -1) * t_ca.reshape(1, nh, 1, 1)
    attn = jax.nn.softmax(attn, axis=-1)
    x_ca = attn @ vT                                         # (B, nh, d, N)
    x_ca = jnp.transpose(x_ca, (0, 3, 1, 2)).reshape(b, n, c)

    feat = x_ca + x_sa
    return jnp.transpose(feat.reshape(b, wd, ht, zd, c), (0, 4, 1, 2, 3))


if __name__ == "__main__":
    key = jax.random.PRNGKey(0)
    kx, kw1, kw2, kef = jax.random.split(key, 4)

    x = jax.random.normal(kx, (B, HIDDEN, W_SP, H_SP, Z_SP), dtype=jnp.float32)

    # nn.Linear(hidden, 4*hidden, bias=False): weight (4C, C), U(+-1/sqrt(C))
    bound = 1.0 / math.sqrt(HIDDEN)
    w_sa = jax.random.uniform(kw1, (4 * HIDDEN, HIDDEN), jnp.float32, -bound, bound)
    w_ca = jax.random.uniform(kw2, (4 * HIDDEN, HIDDEN), jnp.float32, -bound, bound)

    # EF: init_(zeros(input_size, proj_size)) -> U(+-1/sqrt(proj_size))
    ef_bound = 1.0 / math.sqrt(PROJ)
    ef = jax.random.uniform(kef, (N_TOK, PROJ), jnp.float32, -ef_bound, ef_bound)

    # temperatures: nn.Parameter(torch.ones(num_heads, 1, 1)) -> flattened
    t_sa = jnp.ones((NUM_HEADS,), jnp.float32)   # temperature2 (spatial)
    t_ca = jnp.ones((NUM_HEADS,), jnp.float32)   # temperature  (channel)

    consts = build_constants(w_sa, w_ca, ef, t_sa, t_ca,
                             HIDDEN, N_TOK, NUM_HEADS, PROJ)

    fn = jax.jit(danet_head_pallas)
    out = jax.block_until_ready(fn(x, *consts))

    ref = jax.block_until_ready(danet_head_ref(x, w_sa, w_ca, ef, t_sa, t_ca))
    assert out.shape == (B, HIDDEN, W_SP, H_SP, Z_SP), out.shape
    max_err = float(jnp.max(jnp.abs(out - ref)))
    # bf16 MXU path for the fused qkvv matmul and the 0/1 permutation epilogue
    # (f32 accumulation) -> small mixed-precision deviation from f32 reference.
    assert jnp.allclose(out, ref, atol=2e-2, rtol=2e-2), max_err
    print("KERNEL_OK")
</pallas_src>

<mosaic_0001>
module attributes {stable_mosaic.version = 11 : i64} {
  func.func @danet_kernel(%arg0: i32, %arg1: memref<32x128xf32, #tpu.memory_space<vmem>>, %arg2: memref<192x32xbf16, #tpu.memory_space<vmem>>, %arg3: memref<64x64xf32, #tpu.memory_space<vmem>>, %arg4: memref<32x64xf32, #tpu.memory_space<vmem>>, %arg5: memref<32x32xf32, #tpu.memory_space<vmem>>, %arg6: memref<32x32xf32, #tpu.memory_space<vmem>>, %arg7: memref<1x64xf32, #tpu.memory_space<vmem>>, %arg8: memref<64x64xbf16, #tpu.memory_space<vmem>>, %arg9: memref<32x128xf32, #tpu.memory_space<vmem>>) attributes {dimension_semantics = [#tpu.dimension_semantics<arbitrary>], iteration_bounds = array<i64: 1>, scalar_prefetch = 0 : i64, scratch_operands = 0 : i64, tpu.core_type = #tpu.core_type<tc>, window_params = [{pipeline_mode = #tpu.pipeline_mode<synchronous>, transform_indices = @transform_0, window_bounds = array<i64: 32, 128>}, {pipeline_mode = #tpu.pipeline_mode<synchronous>, transform_indices = @transform_1, window_bounds = array<i64: 192, 32>}, {pipeline_mode = #tpu.pipeline_mode<synchronous>, transform_indices = @transform_2, window_bounds = array<i64: 64, 64>}, {pipeline_mode = #tpu.pipeline_mode<synchronous>, transform_indices = @transform_3, window_bounds = array<i64: 32, 64>}, {pipeline_mode = #tpu.pipeline_mode<synchronous>, transform_indices = @transform_4, window_bounds = array<i64: 32, 32>}, {pipeline_mode = #tpu.pipeline_mode<synchronous>, transform_indices = @transform_5, window_bounds = array<i64: 32, 32>}, {pipeline_mode = #tpu.pipeline_mode<synchronous>, transform_indices = @transform_6, window_bounds = array<i64: 1, 64>}, {pipeline_mode = #tpu.pipeline_mode<synchronous>, transform_indices = @transform_7, window_bounds = array<i64: 64, 64>}, {pipeline_mode = #tpu.pipeline_mode<synchronous>, transform_indices = @transform_8, window_bounds = array<i64: 32, 128>}]} {
    %c0 = arith.constant 0 : index
    %c0_0 = arith.constant 0 : index
    %0 = vector.load %arg2[%c0, %c0_0] : memref<192x32xbf16, #tpu.memory_space<vmem>>, vector<192x32xbf16>
    %c0_1 = arith.constant 0 : index
    %c0_2 = arith.constant 0 : index
    %1 = vector.load %arg1[%c0_1, %c0_2] : memref<32x128xf32, #tpu.memory_space<vmem>>, vector<32x128xf32>
    %2 = arith.truncf %1 : vector<32x128xf32> to vector<32x128xbf16>
    %cst = arith.constant dense<0.000000e+00> : vector<192x128xf32>
    %3 = tpu.matmul %0, %2, %cst {dimension_numbers = #tpu.dot_dimension_numbers<[1], [0], [0], [1], [0, 0, 1, 1], [], []>} : vector<192x32xbf16>, vector<32x128xbf16>, vector<192x128xf32> -> vector<192x128xf32>
    %c0_3 = arith.constant 0 : index
    %c0_4 = arith.constant 0 : index
    %4 = vector.load %arg4[%c0_3, %c0_4] : memref<32x64xf32, #tpu.memory_space<vmem>>, vector<32x64xf32>
    %c0_5 = arith.constant 0 : index
    %c0_6 = arith.constant 0 : index
    %5 = vector.load %arg5[%c0_5, %c0_6] : memref<32x32xf32, #tpu.memory_space<vmem>>, vector<32x32xf32>
    %c0_7 = arith.constant 0 : index
    %c0_8 = arith.constant 0 : index
    %6 = vector.load %arg6[%c0_7, %c0_8] : memref<32x32xf32, #tpu.memory_space<vmem>>, vector<32x32xf32>
    %c0_9 = arith.constant 0 : index
    %c0_10 = arith.constant 0 : index
    %7 = vector.load %arg3[%c0_9, %c0_10] : memref<64x64xf32, #tpu.memory_space<vmem>>, vector<64x64xf32>
    %c0_11 = arith.constant 0 : index
    %c0_12 = arith.constant 0 : index
    %8 = vector.load %arg7[%c0_11, %c0_12] : memref<1x64xf32, #tpu.memory_space<vmem>>, vector<1x64xf32>
    %c0_13 = arith.constant 0 : index
    %c0_14 = arith.constant 0 : index
    %9 = vector.load %arg8[%c0_13, %c0_14] : memref<64x64xbf16, #tpu.memory_space<vmem>>, vector<64x64xbf16>
    %10 = vector.extract_strided_slice %3 {offsets = [0, 0], sizes = [32, 64], strides = [1, 1]} : vector<192x128xf32> to vector<32x64xf32>
    %11 = vector.extract_strided_slice %3 {offsets = [32, 0], sizes = [32, 64], strides = [1, 1]} : vector<192x128xf32> to vector<32x64xf32>
    %12 = vector.extract_strided_slice %3 {offsets = [64, 0], sizes = [32, 64], strides = [1, 1]} : vector<192x128xf32> to vector<32x64xf32>
    %13 = vector.extract_strided_slice %3 {offsets = [96, 0], sizes = [32, 64], strides = [1, 1]} : vector<192x128xf32> to vector<32x64xf32>
    %14 = vector.extract_strided_slice %3 {offsets = [128, 0], sizes = [32, 64], strides = [1, 1]} : vector<192x128xf32> to vector<32x64xf32>
    %15 = vector.extract_strided_slice %3 {offsets = [160, 0], sizes = [32, 64], strides = [1, 1]} : vector<192x128xf32> to vector<32x64xf32>
    %16 = arith.mulf %13, %13 : vector<32x64xf32>
    %cst_15 = arith.constant dense<0.000000e+00> : vector<32xf32>
    %17 = vector.multi_reduction <add>, %16, %cst_15 [1] : vector<32x64xf32> to vector<32xf32>
    %18 = vector.shape_cast %17 : vector<32xf32> to vector<32x1xf32>
    %cst_16 = arith.constant 1.000000e-24 : f32
    %19 = vector.broadcast %cst_16 : f32 to vector<32x1xf32>
    %20 = arith.maximumf %18, %19 : vector<32x1xf32>
    %21 = math.rsqrt %20 : vector<32x1xf32>
    %22 = vector.broadcast %21 : vector<32x1xf32> to vector<32x64xf32>
    %23 = arith.mulf %13, %22 : vector<32x64xf32>
    %24 = arith.mulf %14, %14 : vector<32x64xf32>
    %cst_17 = arith.constant dense<0.000000e+00> : vector<32xf32>
    %25 = vector.multi_reduction <add>, %24, %cst_17 [1] : vector<32x64xf32> to vector<32xf32>
    %26 = vector.shape_cast %25 : vector<32xf32> to vector<32x1xf32>
    %cst_18 = arith.constant 1.000000e-24 : f32
    %27 = vector.broadcast %cst_18 : f32 to vector<32x1xf32>
    %28 = arith.maximumf %26, %27 : vector<32x1xf32>
    %29 = math.rsqrt %28 : vector<32x1xf32>
    %30 = vector.broadcast %29 : vector<32x1xf32> to vector<32x64xf32>
    %31 = arith.mulf %14, %30 : vector<32x64xf32>
    %cst_19 = arith.constant dense<0.000000e+00> : vector<32x32xf32>
    %32 = tpu.matmul %23, %31, %cst_19 {dimension_numbers = #tpu.dot_dimension_numbers<[1], [1], [0], [0], [0, 0, 1, 0], [], []>} : vector<32x64xf32>, vector<32x64xf32>, vector<32x32xf32> -> vector<32x32xf32>
    %33 = arith.mulf %32, %5 : vector<32x32xf32>
    %34 = arith.addf %33, %6 : vector<32x32xf32>
    %cst_20 = arith.constant dense<0xFF800000> : vector<32xf32>
    %35 = vector.multi_reduction <maximumf>, %34, %cst_20 [1] : vector<32x32xf32> to vector<32xf32>
    %36 = vector.shape_cast %35 : vector<32xf32> to vector<32x1xf32>
    %37 = vector.broadcast %36 : vector<32x1xf32> to vector<32x32xf32>
    %38 = arith.subf %34, %37 : vector<32x32xf32>
    %39 = math.exp %38 : vector<32x32xf32>
    %cst_21 = arith.constant dense<0.000000e+00> : vector<32xf32>
    %40 = vector.multi_reduction <add>, %39, %cst_21 [1] : vector<32x32xf32> to vector<32xf32>
    %41 = vector.shape_cast %40 : vector<32xf32> to vector<32x1xf32>
    %42 = vector.broadcast %41 : vector<32x1xf32> to vector<32x32xf32>
    %43 = arith.divf %39, %42 : vector<32x32xf32>
    %cst_22 = arith.constant dense<0.000000e+00> : vector<32x64xf32>
    %44 = tpu.matmul %43, %15, %cst_22 {dimension_numbers = #tpu.dot_dimension_numbers<[1], [0], [0], [1], [0, 0, 1, 1], [], []>} : vector<32x32xf32>, vector<32x64xf32>, vector<32x64xf32> -> vector<32x64xf32>
    %45 = arith.mulf %10, %10 : vector<32x64xf32>
    %cst_23 = arith.constant dense<0.000000e+00> : vector<32xf32>
    %46 = vector.multi_reduction <add>, %45, %cst_23 [1] : vector<32x64xf32> to vector<32xf32>
    %47 = vector.shape_cast %46 : vector<32xf32> to vector<32x1xf32>
    %cst_24 = arith.constant 1.000000e-24 : f32
    %48 = vector.broadcast %cst_24 : f32 to vector<32x1xf32>
    %49 = arith.maximumf %47, %48 : vector<32x1xf32>
    %50 = math.rsqrt %49 : vector<32x1xf32>
    %51 = vector.broadcast %50 : vector<32x1xf32> to vector<32x64xf32>
    %52 = arith.mulf %10, %51 : vector<32x64xf32>
    %cst_25 = arith.constant dense<0.000000e+00> : vector<32x64xf32>
    %53 = tpu.matmul %11, %7, %cst_25 {dimension_numbers = #tpu.dot_dimension_numbers<[1], [0], [0], [1], [0, 0, 1, 1], [], []>} : vector<32x64xf32>, vector<64x64xf32>, vector<32x64xf32> -> vector<32x64xf32>
    %54 = arith.mulf %53, %4 : vector<32x64xf32>
    %cst_26 = arith.constant dense<0.000000e+00> : vector<32x64xf32>
    %55 = tpu.matmul %12, %7, %cst_26 {dimension_numbers = #tpu.dot_dimension_numbers<[1], [0], [0], [1], [0, 0, 1, 1], [], []>} : vector<32x64xf32>, vector<64x64xf32>, vector<32x64xf32> -> vector<32x64xf32>
    %56 = arith.mulf %55, %4 : vector<32x64xf32>
    %cst_27 = arith.constant dense<0.000000e+00> : vector<64x64xf32>
    %57 = tpu.matmul %52, %54, %cst_27 {dimension_numbers = #tpu.dot_dimension_numbers<[0], [0], [1], [1], [0, 1, 1, 1], [], []>} : vector<32x64xf32>, vector<32x64xf32>, vector<64x64xf32> -> vector<64x64xf32>
    %58 = vector.broadcast %8 : vector<1x64xf32> to vector<64x64xf32>
    %59 = arith.mulf %57, %58 : vector<64x64xf32>
    %cst_28 = arith.constant dense<0xFF800000> : vector<64xf32>
    %60 = vector.multi_reduction <maximumf>, %59, %cst_28 [1] : vector<64x64xf32> to vector<64xf32>
    %61 = vector.shape_cast %60 : vector<64xf32> to vector<64x1xf32>
    %62 = vector.broadcast %61 : vector<64x1xf32> to vector<64x64xf32>
    %63 = arith.subf %59, %62 : vector<64x64xf32>
    %64 = math.exp %63 : vector<64x64xf32>
    %cst_29 = arith.constant dense<0.000000e+00> : vector<64x32xf32>
    %65 = tpu.matmul %64, %56, %cst_29 {dimension_numbers = #tpu.dot_dimension_numbers<[1], [1], [0], [0], [0, 0, 1, 0], [], []>} : vector<64x64xf32>, vector<32x64xf32>, vector<64x32xf32> -> vector<64x32xf32>
    %cst_30 = arith.constant dense<0.000000e+00> : vector<64x32xf32>
    %66 = tpu.matmul %64, %4, %cst_30 {dimension_numbers = #tpu.dot_dimension_numbers<[1], [1], [0], [0], [0, 0, 1, 0], [], []>} : vector<64x64xf32>, vector<32x64xf32>, vector<64x32xf32> -> vector<64x32xf32>
    %67 = arith.divf %65, %66 : vector<64x32xf32>
    %68 = arith.truncf %67 : vector<64x32xf32> to vector<64x32xbf16>
    %69 = vector.extract_strided_slice %68 {offsets = [0, 0], sizes = [32, 32], strides = [1, 1]} : vector<64x32xbf16> to vector<32x32xbf16>
    %70 = vector.extract_strided_slice %9 {offsets = [0, 0], sizes = [32, 64], strides = [1, 1]} : vector<64x64xbf16> to vector<32x64xbf16>
    %cst_31 = arith.constant dense<0.000000e+00> : vector<32x64xf32>
    %71 = tpu.matmul %69, %70, %cst_31 {dimension_numbers = #tpu.dot_dimension_numbers<[1], [0], [0], [1], [0, 0, 1, 1], [], []>} : vector<32x32xbf16>, vector<32x64xbf16>, vector<32x64xf32> -> vector<32x64xf32>
    %72 = vector.extract_strided_slice %68 {offsets = [32, 0], sizes = [32, 32], strides = [1, 1]} : vector<64x32xbf16> to vector<32x32xbf16>
    %73 = vector.extract_strided_slice %9 {offsets = [32, 0], sizes = [32, 64], strides = [1, 1]} : vector<64x64xbf16> to vector<32x64xbf16>
    %cst_32 = arith.constant dense<0.000000e+00> : vector<32x64xf32>
    %74 = tpu.matmul %72, %73, %cst_32 {dimension_numbers = #tpu.dot_dimension_numbers<[1], [0], [0], [1], [0, 0, 1, 1], [], []>} : vector<32x32xbf16>, vector<32x64xbf16>, vector<32x64xf32> -> vector<32x64xf32>
    %75 = arith.addf %71, %74 : vector<32x64xf32>
    %76 = arith.addf %44, %75 : vector<32x64xf32>
    %c0_33 = arith.constant 0 : index
    %c0_34 = arith.constant 0 : index
    %77 = vector.load %arg9[%c0_33, %c0_34] : memref<32x128xf32, #tpu.memory_space<vmem>>, vector<32x64xf32>
    tpu.vector_store %arg9[%c0_33, %c0_34], %76 {strides = array<i32>} : memref<32x128xf32, #tpu.memory_space<vmem>>, vector<32x64xf32>,
    %78 = vector.extract_strided_slice %3 {offsets = [0, 64], sizes = [32, 64], strides = [1, 1]} : vector<192x128xf32> to vector<32x64xf32>
    %79 = vector.extract_strided_slice %3 {offsets = [32, 64], sizes = [32, 64], strides = [1, 1]} : vector<192x128xf32> to vector<32x64xf32>
    %80 = vector.extract_strided_slice %3 {offsets = [64, 64], sizes = [32, 64], strides = [1, 1]} : vector<192x128xf32> to vector<32x64xf32>
    %81 = vector.extract_strided_slice %3 {offsets = [96, 64], sizes = [32, 64], strides = [1, 1]} : vector<192x128xf32> to vector<32x64xf32>
    %82 = vector.extract_strided_slice %3 {offsets = [128, 64], sizes = [32, 64], strides = [1, 1]} : vector<192x128xf32> to vector<32x64xf32>
    %83 = vector.extract_strided_slice %3 {offsets = [160, 64], sizes = [32, 64], strides = [1, 1]} : vector<192x128xf32> to vector<32x64xf32>
    %84 = arith.mulf %81, %81 : vector<32x64xf32>
    %cst_35 = arith.constant dense<0.000000e+00> : vector<32xf32>
    %85 = vector.multi_reduction <add>, %84, %cst_35 [1] : vector<32x64xf32> to vector<32xf32>
    %86 = vector.shape_cast %85 : vector<32xf32> to vector<32x1xf32>
    %cst_36 = arith.constant 1.000000e-24 : f32
    %87 = vector.broadcast %cst_36 : f32 to vector<32x1xf32>
    %88 = arith.maximumf %86, %87 : vector<32x1xf32>
    %89 = math.rsqrt %88 : vector<32x1xf32>
    %90 = vector.broadcast %89 : vector<32x1xf32> to vector<32x64xf32>
    %91 = arith.mulf %81, %90 : vector<32x64xf32>
    %92 = arith.mulf %82, %82 : vector<32x64xf32>
    %cst_37 = arith.constant dense<0.000000e+00> : vector<32xf32>
    %93 = vector.multi_reduction <add>, %92, %cst_37 [1] : vector<32x64xf32> to vector<32xf32>
    %94 = vector.shape_cast %93 : vector<32xf32> to vector<32x1xf32>
    %cst_38 = arith.constant 1.000000e-24 : f32
    %95 = vector.broadcast %cst_38 : f32 to vector<32x1xf32>
    %96 = arith.maximumf %94, %95 : vector<32x1xf32>
    %97 = math.rsqrt %96 : vector<32x1xf32>
    %98 = vector.broadcast %97 : vector<32x1xf32> to vector<32x64xf32>
    %99 = arith.mulf %82, %98 : vector<32x64xf32>
    %cst_39 = arith.constant dense<0.000000e+00> : vector<32x32xf32>
    %100 = tpu.matmul %91, %99, %cst_39 {dimension_numbers = #tpu.dot_dimension_numbers<[1], [1], [0], [0], [0, 0, 1, 0], [], []>} : vector<32x64xf32>, vector<32x64xf32>, vector<32x32xf32> -> vector<32x32xf32>
    %101 = arith.mulf %100, %5 : vector<32x32xf32>
    %102 = arith.addf %101, %6 : vector<32x32xf32>
    %cst_40 = arith.constant dense<0xFF800000> : vector<32xf32>
    %103 = vector.multi_reduction <maximumf>, %102, %cst_40 [1] : vector<32x32xf32> to vector<32xf32>
    %104 = vector.shape_cast %103 : vector<32xf32> to vector<32x1xf32>
    %105 = vector.broadcast %104 : vector<32x1xf32> to vector<32x32xf32>
    %106 = arith.subf %102, %105 : vector<32x32xf32>
    %107 = math.exp %106 : vector<32x32xf32>
    %cst_41 = arith.constant dense<0.000000e+00> : vector<32xf32>
    %108 = vector.multi_reduction <add>, %107, %cst_41 [1] : vector<32x32xf32> to vector<32xf32>
    %109 = vector.shape_cast %108 : vector<32xf32> to vector<32x1xf32>
    %110 = vector.broadcast %109 : vector<32x1xf32> to vector<32x32xf32>
    %111 = arith.divf %107, %110 : vector<32x32xf32>
    %cst_42 = arith.constant dense<0.000000e+00> : vector<32x64xf32>
    %112 = tpu.matmul %111, %83, %cst_42 {dimension_numbers = #tpu.dot_dimension_numbers<[1], [0], [0], [1], [0, 0, 1, 1], [], []>} : vector<32x32xf32>, vector<32x64xf32>, vector<32x64xf32> -> vector<32x64xf32>
    %113 = arith.mulf %78, %78 : vector<32x64xf32>
    %cst_43 = arith.constant dense<0.000000e+00> : vector<32xf32>
    %114 = vector.multi_reduction <add>, %113, %cst_43 [1] : vector<32x64xf32> to vector<32xf32>
    %115 = vector.shape_cast %114 : vector<32xf32> to vector<32x1xf32>
    %cst_44 = arith.constant 1.000000e-24 : f32
    %116 = vector.broadcast %cst_44 : f32 to vector<32x1xf32>
    %117 = arith.maximumf %115, %116 : vector<32x1xf32>
    %118 = math.rsqrt %117 : vector<32x1xf32>
    %119 = vector.broadcast %118 : vector<32x1xf32> to vector<32x64xf32>
    %120 = arith.mulf %78, %119 : vector<32x64xf32>
    %cst_45 = arith.constant dense<0.000000e+00> : vector<32x64xf32>
    %121 = tpu.matmul %79, %7, %cst_45 {dimension_numbers = #tpu.dot_dimension_numbers<[1], [0], [0], [1], [0, 0, 1, 1], [], []>} : vector<32x64xf32>, vector<64x64xf32>, vector<32x64xf32> -> vector<32x64xf32>
    %122 = arith.mulf %121, %4 : vector<32x64xf32>
    %cst_46 = arith.constant dense<0.000000e+00> : vector<32x64xf32>
    %123 = tpu.matmul %80, %7, %cst_46 {dimension_numbers = #tpu.dot_dimension_numbers<[1], [0], [0], [1], [0, 0, 1, 1], [], []>} : vector<32x64xf32>, vector<64x64xf32>, vector<32x64xf32> -> vector<32x64xf32>
    %124 = arith.mulf %123, %4 : vector<32x64xf32>
    %cst_47 = arith.constant dense<0.000000e+00> : vector<64x64xf32>
    %125 = tpu.matmul %120, %122, %cst_47 {dimension_numbers = #tpu.dot_dimension_numbers<[0], [0], [1], [1], [0, 1, 1, 1], [], []>} : vector<32x64xf32>, vector<32x64xf32>, vector<64x64xf32> -> vector<64x64xf32>
    %126 = vector.broadcast %8 : vector<1x64xf32> to vector<64x64xf32>
    %127 = arith.mulf %125, %126 : vector<64x64xf32>
    %cst_48 = arith.constant dense<0xFF800000> : vector<64xf32>
    %128 = vector.multi_reduction <maximumf>, %127, %cst_48 [1] : vector<64x64xf32> to vector<64xf32>
    %129 = vector.shape_cast %128 : vector<64xf32> to vector<64x1xf32>
    %130 = vector.broadcast %129 : vector<64x1xf32> to vector<64x64xf32>
    %131 = arith.subf %127, %130 : vector<64x64xf32>
    %132 = math.exp %131 : vector<64x64xf32>
    %cst_49 = arith.constant dense<0.000000e+00> : vector<64x32xf32>
    %133 = tpu.matmul %132, %124, %cst_49 {dimension_numbers = #tpu.dot_dimension_numbers<[1], [1], [0], [0], [0, 0, 1, 0], [], []>} : vector<64x64xf32>, vector<32x64xf32>, vector<64x32xf32> -> vector<64x32xf32>
    %cst_50 = arith.constant dense<0.000000e+00> : vector<64x32xf32>
    %134 = tpu.matmul %132, %4, %cst_50 {dimension_numbers = #tpu.dot_dimension_numbers<[1], [1], [0], [0], [0, 0, 1, 0], [], []>} : vector<64x64xf32>, vector<32x64xf32>, vector<64x32xf32> -> vector<64x32xf32>
    %135 = arith.divf %133, %134 : vector<64x32xf32>
    %136 = arith.truncf %135 : vector<64x32xf32> to vector<64x32xbf16>
    %137 = vector.extract_strided_slice %136 {offsets = [0, 0], sizes = [32, 32], strides = [1, 1]} : vector<64x32xbf16> to vector<32x32xbf16>
    %138 = vector.extract_strided_slice %9 {offsets = [0, 0], sizes = [32, 64], strides = [1, 1]} : vector<64x64xbf16> to vector<32x64xbf16>
    %cst_51 = arith.constant dense<0.000000e+00> : vector<32x64xf32>
    %139 = tpu.matmul %137, %138, %cst_51 {dimension_numbers = #tpu.dot_dimension_numbers<[1], [0], [0], [1], [0, 0, 1, 1], [], []>} : vector<32x32xbf16>, vector<32x64xbf16>, vector<32x64xf32> -> vector<32x64xf32>
    %140 = vector.extract_strided_slice %136 {offsets = [32, 0], sizes = [32, 32], strides = [1, 1]} : vector<64x32xbf16> to vector<32x32xbf16>
    %141 = vector.extract_strided_slice %9 {offsets = [32, 0], sizes = [32, 64], strides = [1, 1]} : vector<64x64xbf16> to vector<32x64xbf16>
    %cst_52 = arith.constant dense<0.000000e+00> : vector<32x64xf32>
    %142 = tpu.matmul %140, %141, %cst_52 {dimension_numbers = #tpu.dot_dimension_numbers<[1], [0], [0], [1], [0, 0, 1, 1], [], []>} : vector<32x32xbf16>, vector<32x64xbf16>, vector<32x64xf32> -> vector<32x64xf32>
    %143 = arith.addf %139, %142 : vector<32x64xf32>
    %144 = arith.addf %112, %143 : vector<32x64xf32>
    %c0_53 = arith.constant 0 : index
    %c64 = arith.constant 64 : index
    %145 = vector.load %arg9[%c0_53, %c64] : memref<32x128xf32, #tpu.memory_space<vmem>>, vector<32x64xf32>
    tpu.vector_store %arg9[%c0_53, %c64], %144 {strides = array<i32>} : memref<32x128xf32, #tpu.memory_space<vmem>>, vector<32x64xf32>,
    return
  }
  func.func @transform_0(%arg0: i32) -> (i32, i32) {
    %c0_i32 = arith.constant 0 : i32
    %c0_i32_0 = arith.constant 0 : i32
    %c0_i32_1 = arith.constant 0 : i32
    return %c0_i32, %c0_i32_0 : i32, i32
  }
  func.func @transform_1(%arg0: i32) -> (i32, i32) {
    %c0_i32 = arith.constant 0 : i32
    %c0_i32_0 = arith.constant 0 : i32
    %c0_i32_1 = arith.constant 0 : i32
    return %c0_i32, %c0_i32_0 : i32, i32
  }
  func.func @transform_2(%arg0: i32) -> (i32, i32) {
    %c0_i32 = arith.constant 0 : i32
    %c0_i32_0 = arith.constant 0 : i32
    %c0_i32_1 = arith.constant 0 : i32
    return %c0_i32, %c0_i32_0 : i32, i32
  }
  func.func @transform_3(%arg0: i32) -> (i32, i32) {
    %c0_i32 = arith.constant 0 : i32
    %c0_i32_0 = arith.constant 0 : i32
    %c0_i32_1 = arith.constant 0 : i32
    return %c0_i32, %c0_i32_0 : i32, i32
  }
  func.func @transform_4(%arg0: i32) -> (i32, i32) {
    %c0_i32 = arith.constant 0 : i32
    %c0_i32_0 = arith.constant 0 : i32
    %c0_i32_1 = arith.constant 0 : i32
    return %c0_i32, %c0_i32_0 : i32, i32
  }
  func.func @transform_5(%arg0: i32) -> (i32, i32) {
    %c0_i32 = arith.constant 0 : i32
    %c0_i32_0 = arith.constant 0 : i32
    %c0_i32_1 = arith.constant 0 : i32
    return %c0_i32, %c0_i32_0 : i32, i32
  }
  func.func @transform_6(%arg0: i32) -> (i32, i32) {
    %c0_i32 = arith.constant 0 : i32
    %c0_i32_0 = arith.constant 0 : i32
    %c0_i32_1 = arith.constant 0 : i32
    return %c0_i32, %c0_i32_0 : i32, i32
  }
  func.func @transform_7(%arg0: i32) -> (i32, i32) {
    %c0_i32 = arith.constant 0 : i32
    %c0_i32_0 = arith.constant 0 : i32
    %c0_i32_1 = arith.constant 0 : i32
    return %c0_i32, %c0_i32_0 : i32, i32
  }
  func.func @transform_8(%arg0: i32) -> (i32, i32) {
    %c0_i32 = arith.constant 0 : i32
    %c0_i32_0 = arith.constant 0 : i32
    %c0_i32_1 = arith.constant 0 : i32
    return %c0_i32, %c0_i32_0 : i32, i32
  }
}

</mosaic_0001>

<bundles_post_ra>
// kernel: danet_head_pallas.1
= control target key start
LH: loop header
LB: loop body
LE: loop exit
PB: predicated region body
PF: predicated region fallthrough
CT: control target
= control target key end

     0   :  { %vm120_vm0 = vcmask 261120   ;;  %vm319_vm1 = vcmask 523264   ;;  %s3580_s12 = smov 64   ;;  %vm2744_vm2 = vcmask 1048064   ;;  %s4535_s0 = inlined_call_operand.vmem [shape: f32[32,128], index: 0, kind: input, shape index: {}]   ;;  %s4536_s1 = inlined_call_operand.vmem [shape: bf16[192,32], index: 1, kind: input, shape index: {}]   ;;  %s4537_s2 = inlined_call_operand.vmem [shape: f32[64,64], index: 2, kind: input, shape index: {}]   ;;  %s4538_s3 = inlined_call_operand.vmem [shape: f32[32,64], index: 3, kind: input, shape index: {}]   ;;  %s4539_s6 = inlined_call_operand.vmem [shape: f32[1,64], index: 6, kind: input, shape index: {}]   ;;  %s4540_s4 = inlined_call_operand.vmem [shape: f32[32,32], index: 4, kind: input, shape index: {}]   ;;  %s4541_s5 = inlined_call_operand.vmem [shape: f32[32,32], index: 5, kind: input, shape index: {}]   ;;  %s4542_s7 = inlined_call_operand.vmem [shape: bf16[64,64], index: 7, kind: input, shape index: {}]   ;;  %s4543_s8 = inlined_call_operand.vmem [shape: f32[32,128], index: 8, kind: output, shape index: {}]  }
   0x1   :  { %v56_v0 = vld [vmem:[%s4535_s0 + $0x10] sm:$0xff]  ;;  %v57_v1 = vld [vmem:[%s4535_s0 + $0x18] sm:$0xff]  ;;  %v54_v2 = vld [vmem:[%s4535_s0] sm:$0xff] }
   0x2   :  { %v59_v3 = vpack.c.bf16 %v57_v1, %v56_v0  ;;  %v55_v4 = vld [vmem:[%s4535_s0 + $0x8] sm:$0xff]  ;;  %v3402_v6 = vld [vmem:[%s4536_s1] sm:$0xff]   ;;  %v3404_v8 = vld [vmem:[%s4536_s1 + $0x10] sm:$0xff]  }
   0x3   :  { %v58_v5 = vpack.c.bf16 %v55_v4, %v54_v2  ;;  %3080 = vmatprep.mubr.msk.bf16.mxu0 %vm120_vm0, %v3402_v6  ;;  %v3403_v7 = vld [vmem:[%s4536_s1 + $0x8] sm:$0xff]   ;;  %v3405_v9 = vld [vmem:[%s4536_s1 + $0x18] sm:$0xff]   ;;  %v3406_v10 = vld [vmem:[%s4536_s1 + $0x20] sm:$0xff]  }
   0x4   :  { %3076 = vmatprep.subr.bf16.mxu0 %v59_v3  ;;  %v3407_v11 = vld [vmem:[%s4536_s1 + $0x28] sm:$0xff]   ;;  %v3408_v12 = vld [vmem:[%s4536_s1 + $0x30] sm:$0xff]   ;;  %v3409_v13 = vld [vmem:[%s4536_s1 + $0x38] sm:$0xff]  }
   0x5   :  { %3077 = vmatpush3.bf16.msra.mxu0 %v59_v3  ;;  %v3410_v14 = vld [vmem:[%s4536_s1 + $0x40] sm:$0xff]   ;;  %v3411_v15 = vld [vmem:[%s4536_s1 + $0x48] sm:$0xff]  }
   0x6   :  { %3078 = vmatprep.subr.bf16.mxu0 %v58_v5 }
   0x9   :  { %3079 = vmatpush3.bf16.msra.mxu0 %v58_v5 }
   0xc   :  { %3081 = vmatmul.mubr.msk.bf16.vlgmr.msra.gmra.mxu0 %vm120_vm0, %v3403_v7 }
   0xd   :  { %3084 = vmatprep.mubr.msk.bf16.mxu0 %vm120_vm0, %v3404_v8 }
  0x14   :  { %3085 = vmatmul.mubr.msk.bf16.gmra.mxu0 %vm120_vm0, %v3405_v9 }
  0x15   :  { %3088 = vmatprep.mubr.msk.bf16.mxu0 %vm120_vm0, %v3406_v10 }
  0x1c   :  { %3089 = vmatmul.mubr.msk.bf16.gmra.mxu0 %vm120_vm0, %v3407_v11 }
  0x1d   :  { %3092 = vmatprep.mubr.msk.bf16.mxu0 %vm120_vm0, %v3408_v12 }
  0x24   :  { %3093 = vmatmul.mubr.msk.bf16.gmra.mxu0 %vm120_vm0, %v3409_v13 }
  0x25   :  { %3096 = vmatprep.mubr.msk.bf16.mxu0 %vm120_vm0, %v3410_v14 }
  0x2c   :  { %3097 = vmatmul.mubr.msk.bf16.gmra.mxu0 %vm120_vm0, %v3411_v15 }
  0xcc   :  { %v3678_v16 = vpop.f32.mrf.mxu0 }
  0xcd   :  { %v3778_v55 = vmul.f32 %v3678_v16, %v3678_v16 }
  0xce   :  { %v3680_v17 = vpop.f32.mrf.mxu0 }
  0xcf   :  { %v3766_v51 = vmul.f32 %v3680_v17, %v3680_v17  ;;  %v543_v58 = vsel %vm319_vm1, %v3778_v55, 0.0 }
  0xd0   :  { %v3682_v18 = vpop.f32.mrf.mxu0 }
  0xd1   :  { %v537_v54 = vsel %vm319_vm1, %v3766_v51, 0.0  ;;  %v3784_v57 = vmul.f32 %v3682_v18, %v3682_v18 }
  0xd2   :  { %v3684_v19 = vpop.f32.mrf.mxu0 }
  0xd3   :  { %v3772_v53 = vmul.f32 %v3684_v19, %v3684_v19  ;;  %v546_v59 = vsel %vm319_vm1, %v3784_v57, 0.0 }
  0xd4   :  { %v3686_v20 = vpop.f32.mrf.mxu0 }
  0xd5   :  { %v540_v56 = vsel %vm319_vm1, %v3772_v53, 0.0 }
  0xd6   :  { %v3688_v21 = vpop.f32.mrf.mxu0 }
  0xd8   :  { %v3690_v22 = vpop.f32.mrf.mxu0 }
  0xda   :  { %v3692_v23 = vpop.f32.mrf.mxu0 }
  0xdc   :  { %v3694_v24 = vpop.f32.mrf.mxu0 }
  0xdd   :  { %4561 = vst [vmem:[#allocation2_spill] sm:$0xff] %v3694_v24 }
  0xde   :  { %v3696_v25 = vpop.f32.mrf.mxu0 }
  0xdf   :  { %4562 = vst [vmem:[#allocation3_spill] sm:$0xff] %v3696_v25 }
  0xe0   :  { %v3698_v26 = vpop.f32.mrf.mxu0 }
  0xe1   :  { %4563 = vst [vmem:[#allocation4_spill] sm:$0xff] %v3698_v26 }
  0xe2   :  { %v3700_v27 = vpop.f32.mrf.mxu0 }
  0xe3   :  { %4564 = vst [vmem:[#allocation5_spill] sm:$0xff] %v3700_v27 }
  0xe4   :  { %v3702_v28 = vpop.f32.mrf.mxu0 }
  0xe5   :  { %4565 = vst [vmem:[#allocation6_spill] sm:$0xff] %v3702_v28  ;;  %v3754_v47 = vmul.f32 %v3702_v28, %v3702_v28 }
  0xe6   :  { %v3704_v29 = vpop.f32.mrf.mxu0 }
  0xe7   :  { %4566 = vst [vmem:[#allocation7_spill] sm:$0xff] %v3704_v29  ;;  %v3742_v43 = vmul.f32 %v3704_v29, %v3704_v29  ;;  %v326_v50 = vsel %vm319_vm1, %v3754_v47, 0.0 }
  0xe8   :  { %v3706_v30 = vpop.f32.mrf.mxu0 }
  0xe9   :  { %4567 = vst [vmem:[#allocation8_spill] sm:$0xff] %v3706_v30  ;;  %v320_v46 = vsel %vm319_vm1, %v3742_v43, 0.0  ;;  %v3760_v49 = vmul.f32 %v3706_v30, %v3706_v30 }
  0xea   :  { %v3708_v31 = vpop.f32.mrf.mxu0 }
  0xeb   :  { %4568 = vst [vmem:[#allocation9_spill] sm:$0xff] %v3708_v31  ;;  %v3748_v45 = vmul.f32 %v3708_v31, %v3708_v31  ;;  %v329_v52 = vsel %vm319_vm1, %v3760_v49, 0.0 }
  0xec   :  { %v3710_v32 = vpop.f32.mrf.mxu0 }
  0xed   :  { %4569 = vst [vmem:[#allocation10_spill] sm:$0xff] %v3710_v32  ;;  %v3730_v39 = vmul.f32 %v3710_v32, %v3710_v32  ;;  %v323_v48 = vsel %vm319_vm1, %v3748_v45, 0.0 }
  0xee   :  { %v3712_v33 = vpop.f32.mrf.mxu0 }
  0xef   :  { %4570 = vst [vmem:[#allocation11_spill] sm:$0xff] %v3712_v33  ;;  %v3736_v41 = vmul.f32 %v3712_v33, %v3712_v33  ;;  %v354_v42 = vsel %vm319_vm1, %v3730_v39, 0.0 }
  0xf0   :  { %v3714_v34 = vpop.f32.mrf.mxu0 }
  0xf1   :  { %4571 = vst [vmem:[#allocation12_spill] sm:$0xff] %v3714_v34  ;;  %v3718_v35 = vmul.f32 %v3714_v34, %v3714_v34  ;;  %v348_v44 = vsel %vm319_vm1, %v3736_v41, 0.0 }
  0xf2   :  { %v3720_v36 = vpop.f32.mrf.mxu0 }
  0xf3   :  { %4572 = vst [vmem:[#allocation13_spill] sm:$0xff] %v3720_v36  ;;  %v357_v37 = vsel %vm319_vm1, %v3718_v35, 0.0  ;;  %v3726_v38 = vmul.f32 %v3720_v36, %v3720_v36 }
  0xf4   :  { %358 = vadd.xlane.f32.xlu0 %v357_v37 }
  0xf5   :  { %v351_v40 = vsel %vm319_vm1, %v3726_v38, 0.0 }
  0xf6   :  { %352 = vadd.xlane.f32.xlu1 %v351_v40 }
  0xf8   :  { %355 = vadd.xlane.f32.xlu0 %v354_v42 }
  0xfa   :  { %349 = vadd.xlane.f32.xlu1 %v348_v44 }
  0xfc   :  { %321 = vadd.xlane.f32.xlu0 %v320_v46 }
  0xfe   :  { %324 = vadd.xlane.f32.xlu1 %v323_v48 }
 0x100   :  { %327 = vadd.xlane.f32.xlu0 %v326_v50 }
 0x102   :  { %330 = vadd.xlane.f32.xlu1 %v329_v52 }
 0x104   :  { %538 = vadd.xlane.f32.xlu0 %v537_v54 }
 0x106   :  { %541 = vadd.xlane.f32.xlu1 %v540_v56 }
 0x108   :  { %544 = vadd.xlane.f32.xlu0 %v543_v58 }
 0x10a   :  { %547 = vadd.xlane.f32.xlu1 %v546_v59 }
 0x17d   :  { %v359_v60 = vpop.xlane.xlu0 %358 }
 0x17e   :  { %v363_v61 = vmax.f32 %v359_v60, 1e-24 }
 0x17f   :  { %v353_v62 = vpop.xlane.xlu1 %352 }
 0x180   :  { %3418 = vrsqrt.f32 %v363_v61  ;;  %v361_v63 = vmax.f32 %v353_v62, 1e-24 }
 0x181   :  { %v356_v0 = vpop.xlane.xlu0 %355 }
 0x182   :  { %v362_v1 = vmax.f32 %v356_v0, 1e-24  ;;  %3420 = vrsqrt.f32 %v361_v63  ;;  %v3806_v63 = vld [vmem:[%s4537_s2 + $0x38] sm:$0xff] }
 0x183   :  { %v350_v2 = vpop.xlane.xlu1 %349 }
 0x184   :  { %3422 = vrsqrt.f32 %v362_v1  ;;  %v360_v3 = vmax.f32 %v350_v2, 1e-24 }
 0x185   :  { %v322_v4 = vpop.xlane.xlu0 %321 }
 0x186   :  { %v332_v5 = vmax.f32 %v322_v4, 1e-24  ;;  %3424 = vrsqrt.f32 %v360_v3 }
 0x187   :  { %v325_v6 = vpop.xlane.xlu1 %324 }
 0x188   :  { %3426 = vrsqrt.f32 %v332_v5  ;;  %v333_v8 = vmax.f32 %v325_v6, 1e-24  ;;  %v3816_v6 = vld [vmem:[%s4537_s2 + $0x30] sm:$0xff] }
 0x189   :  { %v328_v7 = vpop.xlane.xlu0 %327 }
 0x18a   :  { %v334_v9 = vmax.f32 %v328_v7, 1e-24  ;;  %3428 = vrsqrt.f32 %v333_v8  ;;  %v3824_v8 = vld [vmem:[%s4537_s2 + $0x28] sm:$0xff] }
 0x18b   :  { %v331_v10 = vpop.xlane.xlu1 %330 }
 0x18c   :  { %v335_v13 = vmax.f32 %v331_v10, 1e-24  ;;  %3430 = vrsqrt.f32 %v334_v9 }
 0x18d   :  { %v3419_v11 = vpop.eup %3418  ;;  %v539_v12 = vpop.xlane.xlu0 %538 }
 0x18e   :  { %v549_v14 = vmax.f32 %v539_v12, 1e-24  ;;  %v371_v15 = vmul.f32 %v3419_v11, %v3714_v34  ;;  %v3833_v11 = vld [vmem:[%s4537_s2 + $0x20] sm:$0xff] }
 0x18f   :  { %v542_v37 = vpop.xlane.xlu1 %541  ;;  %v3421_v40 = vpop.eup %3420 }
 0x190   :  { %3432 = vrsqrt.f32 %v549_v14  ;;  %v550_v42 = vmax.f32 %v542_v37, 1e-24  ;;  %3104 = vmatprep.subr.msk.mxu1 %vm319_vm1, %v371_v15  ;;  %v369_v56 = vmul.f32 %v3421_v40, %v3720_v36  ;;  %v3858_v40 = vld [vmem:[%s4537_s2 + $0x8] sm:$0xff] }
 0x191   :  { %v3423_v44 = vpop.eup %3422  ;;  %3105 = vmatpush3.xpose.msk.msra.mxu1 %vm319_vm1, %v371_v15  ;;  %v545_v46 = vpop.xlane.xlu0 %544  ;;  %3434 = vrsqrt.f32 %v335_v13  ;;  %v3841_v13 = vld [vmem:[%s4537_s2 + $0x18] sm:$0xff]  ;;  %v3851_v15 = vld [vmem:[%s4537_s2 + $0x10] sm:$0xff] }
 0x192   :  { %v370_v48 = vmul.f32 %v3423_v44, %v3710_v32  ;;  %3436 = vrsqrt.f32 %v550_v42  ;;  %v551_v50 = vmax.f32 %v545_v46, 1e-24  ;;  %v3866_v44 = vld [vmem:[%s4537_s2] sm:$0xff]  ;;  %v3412_v46 = vld [vmem:[%s4536_s1 + $0x50] sm:$0xff]  }
 0x193   :  { %v3425_v52 = vpop.eup %3424  ;;  %v548_v54 = vpop.xlane.xlu1 %547  ;;  %3100 = vmatprep.mubr.msk.bf16.mxu0 %vm120_vm0, %v3412_v46 }
 0x194   :  { %3106 = vmatprep.subr.msk.mxu1 %vm319_vm1, %v370_v48  ;;  %3438 = vrsqrt.f32 %v551_v50  ;;  %v552_v60 = vmax.f32 %v548_v54, 1e-24  ;;  %v368_v61 = vmul.f32 %v3425_v52, %v3712_v33 }
 0x195   :  { %v3427_v58 = vpop.eup %3426  ;;  %3107 = vmatpush3.xpose.msk.msra.mxu1 %vm319_vm1, %v370_v48  ;;  %v3413_v48 = vld [vmem:[%s4536_s1 + $0x58] sm:$0xff]  }
 0x196   :  { %3108 = vmatprep.subr.msk.mxu1 %vm319_vm1, %v369_v56  ;;  %v340_v59 = vmul.f32 %v3427_v58, %v3704_v29  ;;  %3440 = vrsqrt.f32 %v552_v60  ;;  %3101 = vmatmul.mubr.msk.bf16.gmra.mxu0 %vm120_vm0, %v3413_v48 }
 0x197   :  { %v3429_v62 = vpop.eup %3428 }
 0x198   :  { %3112 = vmatprep.mubr.msk.f32.mxu1 %vm319_vm1, %v340_v59  ;;  %v341_v3 = vmul.f32 %v3429_v62, %v3708_v31 }
 0x199   :  { %3109 = vmatpush3.xpose.msk.msra.mxu1 %vm319_vm1, %v369_v56  ;;  %v3431_v0 = vpop.eup %3430 }
 0x19a   :  { %3110 = vmatprep.subr.msk.mxu1 %vm319_vm1, %v368_v61  ;;  %v342_v5 = vmul.f32 %v3431_v0, %v3702_v28 }
 0x19d   :  { %v3433_v1 = vpop.eup %3432  ;;  %3111 = vmatpush3.xpose.msk.msra.mxu1 %vm319_vm1, %v368_v61 }
 0x19e   :  { %v557_v2 = vmul.f32 %v3433_v1, %v3680_v17  ;;  %3118 = vmatprep.subr.mxu1 %v3806_v63  ;;  %v3435_v4 = vpop.eup %3434  ;;  %v3922_v1 = vld [vmem:[%s4538_s3 + $0x18] sm:$0xff] }
 0x19f   :  { %v3437_v7 = vpop.eup %3436  ;;  %v343_v9 = vmul.f32 %v3435_v4, %v3706_v30 }
 0x1a0   :  { %763 = vxpose.xlu0.b32.start [1/4] (short) (narrow) %v557_v2, 64  ;;  %3113 = vmatmul.mubr.msk.f32.vlgmr.msra.gmra.mxu1 %vm319_vm1, %v341_v3  ;;  %v558_v10 = vmul.f32 %v3437_v7, %v3684_v19  ;;  %v3927_v3 = vld [vmem:[%s4538_s3 + $0x10] sm:$0xff] }
 0x1a1   :  { %3115 = vmatprep.mubr.msk.f32.mxu1 %vm319_vm1, %v342_v5  ;;  %3119 = vmatpush3.msra.mxu1 %v3806_v63  ;;  %v3439_v12 = vpop.eup %3438  ;;  %v3933_v5 = vld [vmem:[%s4538_s3 + $0x8] sm:$0xff] }
 0x1a2   :  { %3120 = vmatprep.subr.mxu1 %v3816_v6  ;;  %v559_v14 = vmul.f32 %v3439_v12, %v3678_v16  ;;  %v3939_v12 = vld [vmem:[%s4538_s3] sm:$0xff] }
 0x1a3   :  { %3121 = vmatpush3.msra.mxu1 %v3816_v6  ;;  %v3441_v37 = vpop.eup %3440 }
 0x1a4   :  { %3116 = vmatmul.mubr.msk.f32.gmra.mxu1 %vm319_vm1, %v343_v9  ;;  %3122 = vmatprep.subr.mxu1 %v3824_v8  ;;  %v560_v42 = vmul.f32 %v3441_v37, %v3682_v18 }
 0x1a5   :  { %764 = vxpose.xlu0.b32.cont [2/4] (short) (narrow) %v558_v10, 64  ;;  %3123 = vmatpush3.msra.mxu1 %v3824_v8 }
 0x1a6   :  { %3134 = vmatprep.mubr.msk.f32.mxu1 %vm319_vm1, %v3688_v21  ;;  %3124 = vmatprep.subr.mxu1 %v3833_v11 }
 0x1a7   :  { %3125 = vmatpush3.msra.mxu1 %v3833_v11 }
 0x1a8   :  { %3126 = vmatprep.subr.mxu1 %v3841_v13 }
 0x1a9   :  { %765 = vxpose.xlu0.b32.cont [3/4] (short) (narrow) %v559_v14, 64  ;;  %3127 = vmatpush3.msra.mxu1 %v3841_v13 }
 0x1aa   :  { %3128 = vmatprep.subr.mxu1 %v3851_v15 }
 0x1ab   :  { %3129 = vmatpush3.msra.mxu1 %v3851_v15 }
 0x1ac   :  { %3130 = vmatprep.subr.mxu1 %v3858_v40 }
 0x1ad   :  { %766 = vxpose.xlu0.b32.end [4/4] (short) (narrow) %v560_v42, 64  ;;  %3131 = vmatpush3.msra.mxu1 %v3858_v40 }
 0x1ae   :  { %3132 = vmatprep.subr.mxu1 %v3866_v44 }
 0x1af   :  { %3133 = vmatpush3.msra.mxu1 %v3866_v44 }
 0x1b0   :  { %3135 = vmatmul.mubr.msk.f32.vlgmr.msra.gmra.mxu1 %vm319_vm1, %v3692_v23  ;;  %3140 = vmatprep.subr.mxu1 %v3806_v63 }
 0x1b1   :  { %3137 = vmatprep.mubr.msk.f32.mxu1 %vm319_vm1, %v3686_v20  ;;  %3141 = vmatpush3.msra.mxu1 %v3806_v63 }
 0x1b2   :  { %3142 = vmatprep.subr.mxu1 %v3816_v6 }
 0x1b3   :  { %3143 = vmatpush3.msra.mxu1 %v3816_v6 }
 0x1b4   :  { %3138 = vmatmul.mubr.msk.f32.gmra.mxu1 %vm319_vm1, %v3690_v22  ;;  %3144 = vmatprep.subr.mxu1 %v3824_v8 }
 0x1b5   :  { %3145 = vmatpush3.msra.mxu1 %v3824_v8  ;;  %3156 = vmatprep.mubr.msk.f32.mxu1 %vm319_vm1, %v3696_v25 }
 0x1b6   :  { %3146 = vmatprep.subr.mxu1 %v3833_v11 }
 0x1b7   :  { %3147 = vmatpush3.msra.mxu1 %v3833_v11 }
 0x1b8   :  { %3148 = vmatprep.subr.mxu1 %v3841_v13 }
 0x1b9   :  { %3149 = vmatpush3.msra.mxu1 %v3841_v13 }
 0x1ba   :  { %3150 = vmatprep.subr.mxu1 %v3851_v15 }
 0x1bb   :  { %3151 = vmatpush3.msra.mxu1 %v3851_v15 }
 0x1bc   :  { %3152 = vmatprep.subr.mxu1 %v3858_v40 }
 0x1bd   :  { %3153 = vmatpush3.msra.mxu1 %v3858_v40 }
 0x1be   :  { %3154 = vmatprep.subr.mxu1 %v3866_v44 }
 0x1bf   :  { %3155 = vmatpush3.msra.mxu1 %v3866_v44 }
 0x1c0   :  { %3157 = vmatmul.mubr.msk.f32.vlgmr.msra.gmra.mxu1 %vm319_vm1, %v3700_v27 }
 0x1c1   :  { %3159 = vmatprep.mubr.msk.f32.mxu1 %vm319_vm1, %v3694_v24 }
 0x1c4   :  { %3160 = vmatmul.mubr.msk.f32.gmra.mxu1 %vm319_vm1, %v3698_v26 }
 0x21d   :  { %v779_v50 = vpop.trf.xlu0 }
 0x21e   :  { %3170 = vmatprep.mubr.msk.f32.mxu0 %vm120_vm0, %v779_v50 }
 0x221   :  { %v780_v54 = vpop.trf.xlu0 }
 0x225   :  { %v781_v59 = vpop.trf.xlu0 }
 0x229   :  { %v782_v62 = vpop.trf.xlu0 }
 0x22d   :  { %v783_v9 = vpop.trf.xlu0 }
 0x231   :  { %v784_v42 = vpop.trf.xlu0 }
 0x235   :  { %v785_v50 = vpop.trf.xlu0 }
 0x260   :  { %v3911_v52 = vpop.f32.mrf.mxu1 }
 0x262   :  { %v3913_v56 = vpop.f32.mrf.mxu1 }
 0x264   :  { %v3915_v58 = vpop.f32.mrf.mxu1 }
 0x266   :  { %v3917_v60 = vpop.f32.mrf.mxu1 }
 0x270   :  { %v3136_v61 = vpop.f32.mrf.mxu1 }
 0x271   :  { %v659_v14 = vmul.f32 %v3136_v61, %v3933_v5 }
 0x272   :  { %v639_v0 = vpop.f32.mrf.mxu1 }
 0x273   :  { %v658_v37 = vmul.f32 %v639_v0, %v3939_v12 }
 0x274   :  { %v3139_v2 = vpop.f32.mrf.mxu1 }
 0x275   :  { %v661_v4 = vmul.f32 %v3139_v2, %v3922_v1 }
 0x276   :  { %v649_v7 = vpop.f32.mrf.mxu1 }
 0x277   :  { %v660_v10 = vmul.f32 %v649_v7, %v3927_v3  ;;  %3162 = vmatprep.subr.mxu0 %v661_v4  ;;  %v3978_v7 = vpop.f32.mrf.mxu0 }
 0x278   :  { %3163 = vmatpush3.msra.mxu0 %v661_v4 }
 0x279   :  { %3164 = vmatprep.subr.mxu0 %v660_v10 }
 0x27a   :  { %3165 = vmatpush3.msra.mxu0 %v660_v10 }
 0x27b   :  { %3166 = vmatprep.subr.mxu0 %v659_v14 }
 0x27c   :  { %3167 = vmatpush3.msra.mxu0 %v659_v14 }
 0x27d   :  { %3168 = vmatprep.subr.mxu0 %v658_v37 }
 0x27e   :  { %3169 = vmatpush3.msra.mxu0 %v658_v37  ;;  %v2801_v37 = vld [vmem:[%s4539_s6] ss:$0 sm:$0xff] }
 0x27f   :  { %3171 = vmatmul.mubr.msk.f32.vlgmr.msra.gmra.mxu0 %vm120_vm0, %v780_v54  ;;  %3202 = vmatprep.subr.msk.mxu0 %vm319_vm1, %v3922_v1 }
 0x280   :  { %v3158_v46 = vpop.f32.mrf.mxu1  ;;  %3173 = vmatprep.mubr.msk.f32.mxu0 %vm120_vm0, %v781_v59  ;;  %3203 = vmatpush3.xpose.msk.msra.mxu0 %vm319_vm1, %v3922_v1 }
 0x281   :  { %3204 = vmatprep.subr.msk.mxu0 %vm319_vm1, %v3927_v3  ;;  %v760_v2 = vmul.f32 %v3158_v46, %v3933_v5 }
 0x282   :  { %v740_v48 = vpop.f32.mrf.mxu1 }
 0x283   :  { %3174 = vmatmul.mubr.msk.f32.gmra.mxu0 %vm120_vm0, %v782_v62  ;;  %v786_v62 = vpop.trf.xlu0  ;;  %v759_v4 = vmul.f32 %v740_v48, %v3939_v12 }
 0x284   :  { %v3161_v61 = vpop.f32.mrf.mxu1  ;;  %3176 = vmatprep.mubr.msk.f32.mxu0 %vm120_vm0, %v783_v9  ;;  %3205 = vmatpush3.xpose.msk.msra.mxu0 %vm319_vm1, %v3927_v3  ;;  %v3980_v9 = vpop.f32.mrf.mxu0 }
 0x285   :  { %v762_v54 = vmul.f32 %v3161_v61, %v3922_v1  ;;  %3206 = vmatprep.subr.msk.mxu0 %vm319_vm1, %v3933_v5 }
 0x286   :  { %v750_v59 = vpop.f32.mrf.mxu1  ;;  %v3982_v10 = vpop.f32.mrf.mxu0 }
 0x287   :  { %v761_v0 = vmul.f32 %v750_v59, %v3927_v3  ;;  %3182 = vmatprep.subr.msk.mxu1 %vm319_vm1, %v762_v54  ;;  %3177 = vmatmul.mubr.msk.f32.gmra.mxu0 %vm120_vm0, %v784_v42 }
 0x288   :  { %3183 = vmatpush3.xpose.msk.msra.mxu1 %vm319_vm1, %v762_v54  ;;  %3179 = vmatprep.mubr.msk.f32.mxu0 %vm120_vm0, %v785_v50  ;;  %v3984_v14 = vpop.f32.mrf.mxu0 }
 0x289   :  { %3184 = vmatprep.subr.msk.mxu1 %vm319_vm1, %v761_v0  ;;  %3207 = vmatpush3.xpose.msk.msra.mxu0 %vm319_vm1, %v3933_v5 }
 0x28a   :  { %3208 = vmatprep.subr.msk.mxu0 %vm319_vm1, %v3939_v12 }
 0x28b   :  { %3180 = vmatmul.mubr.msk.f32.gmra.mxu0 %vm120_vm0, %v786_v62 }
 0x28c   :  { %3185 = vmatpush3.xpose.msk.msra.mxu1 %vm319_vm1, %v761_v0 }
 0x28d   :  { %3186 = vmatprep.subr.msk.mxu1 %vm319_vm1, %v760_v2  ;;  %3209 = vmatpush3.xpose.msk.msra.mxu0 %vm319_vm1, %v3939_v12 }
 0x290   :  { %3187 = vmatpush3.xpose.msk.msra.mxu1 %vm319_vm1, %v760_v2 }
 0x291   :  { %3188 = vmatprep.subr.msk.mxu1 %vm319_vm1, %v759_v4 }
 0x294   :  { %3189 = vmatpush3.xpose.msk.msra.mxu1 %vm319_vm1, %v759_v4 }
 0x33f   :  { %v3172_v42 = vpop.f32.mrf.mxu0 }
 0x340   :  { %v3989_v46 = vmul.f32 %v3172_v42, %v2801_v37 }
 0x341   :  { %v885_v48 = vpop.f32.mrf.mxu0 }
 0x342   :  { %v941_v50 = vsel %vm319_vm1, %v3989_v46, -inf  ;;  %v930_v61 = vmul.f32 %v2801_v37, %v885_v48 }
 0x343   :  { %942 = vmax.xlane.f32.xlu1 %v941_v50  ;;  %v3175_v54 = vpop.f32.mrf.mxu0 }
 0x344   :  { %v938_v59 = vsel %vm319_vm1, %v930_v61, -inf  ;;  %v3994_v0 = vmul.f32 %v3175_v54, %v2801_v37 }
 0x345   :  { %v895_v62 = vpop.f32.mrf.mxu0 }
 0x346   :  { %v947_v4 = vsel %vm319_vm1, %v3994_v0, -inf  ;;  %v932_v24 = vmul.f32 %v2801_v37, %v895_v62  ;;  %v290_v62 = vld [vmem:[%s4540_s4] sm:$0xff] }
 0x347   :  { %939 = vmax.xlane.f32.xlu1 %v938_v59  ;;  %v3178_v2 = vpop.f32.mrf.mxu0 }
 0x348   :  { %v944_v27 = vsel %vm319_vm1, %v932_v24, -inf  ;;  %v3999_v25 = vmul.f32 %v3178_v2, %v2801_v37 }
 0x349   :  { %v905_v42 = vpop.f32.mrf.mxu0 }
 0x34a   :  { %v953_v50 = vsel %vm319_vm1, %v3999_v25, -inf  ;;  %v4003_v54 = vmul.f32 %v2801_v37, %v905_v42  ;;  %v4020_v42 = vld [vmem:[%s4540_s4 + $0x8] sm:$0xff] }
 0x34b   :  { %948 = vmax.xlane.f32.xlu1 %v947_v4  ;;  %v3181_v48 = vpop.f32.mrf.mxu0  ;;  %4573 = vst [vmem:[#allocation14_spill] sm:$0xff] %v4020_v42 }
 0x34c   :  { %v950_v30 = vsel %vm319_vm1, %v4003_v54, -inf  ;;  %v4013_v2 = vmul.f32 %v3181_v48, %v2801_v37  ;;  %v292_v48 = vld [vmem:[%s4540_s4 + $0x10] sm:$0xff] }
 0x34d   :  { %v915_v59 = vpop.f32.mrf.mxu0 }
 0x34e   :  { %v4007_v28 = vmul.f32 %v2801_v37, %v915_v59  ;;  %v4040_v59 = vld [vmem:[%s4541_s5 + $0x8] sm:$0xff] }
 0x34f   :  { %945 = vmax.xlane.f32.xlu1 %v944_v27  ;;  %v481_v27 = vmul.f32 %v3913_v56, %v290_v62  ;;  %v959_v56 = vsel %vm319_vm1, %v4013_v2, -inf  ;;  %4575 = vst [vmem:[#allocation16_spill] sm:$0xff] %v4040_v59  ;;  %v296_v62 = vld [vmem:[%s4541_s5 + $0x10] sm:$0xff] }
 0x350   :  { %v956_v4 = vsel %vm319_vm1, %v4007_v28, -inf }
 0x353   :  { %954 = vmax.xlane.f32.xlu1 %v953_v50  ;;  %v4025_v50 = vld [vmem:[%s4541_s5] sm:$0xff] }
 0x354   :  { %4574 = vst [vmem:[#allocation15_spill] sm:$0xff] %v4025_v50  ;;  %v4032_v37 = vadd.f32 %v481_v27, %v4025_v50  ;;  %v483_v27 = vmul.f32 %v3917_v60, %v292_v48  ;;  %v3414_v50 = vld [vmem:[%s4542_s7 + $0x18] sm:$0xff]  }
 0x355   :  { %3222 = vmatprep.subr.bf16.mxu1 %v3414_v50  ;;  %v4068_v60 = vld [vmem:[%s4541_s5 + $0x18] sm:$0xff] }
 0x356   :  { %v4063_v29 = vadd.f32 %v483_v27, %v296_v62  ;;  %4577 = vst [vmem:[#allocation18_spill] sm:$0xff] %v4068_v60 }
 0x357   :  { %951 = vmax.xlane.f32.xlu1 %v950_v30  ;;  %v482_v30 = vmul.f32 %v3911_v52, %v4020_v42  ;;  %v4045_v52 = vld [vmem:[%s4540_s4 + $0x18] sm:$0xff] }
 0x358   :  { %4576 = vst [vmem:[#allocation17_spill] sm:$0xff] %v4045_v52  ;;  %v484_v42 = vmul.f32 %v3915_v58, %v4045_v52 }
 0x35a   :  { %v4073_v48 = vadd.f32 %v484_v42, %v4068_v60 }
 0x35b   :  { %957 = vmax.xlane.f32.xlu1 %v956_v4  ;;  %v489_v4 = vsel %vm120_vm0, %v4032_v37, -inf }
 0x35c   :  { %v498_v58 = vsel %vm120_vm0, %v4073_v48, -inf }
 0x35f   :  { %960 = vmax.xlane.f32.xlu1 %v959_v56  ;;  %v4054_v56 = vadd.f32 %v482_v30, %v4040_v59  ;;  %v495_v30 = vsel %vm120_vm0, %v4063_v29, -inf }
 0x361   :  { %v492_v31 = vsel %vm120_vm0, %v4054_v56, -inf }
 0x363   :  { %490 = vmax.xlane.f32.xlu1 %v489_v4 }
 0x367   :  { %493 = vmax.xlane.f32.xlu1 %v492_v31 }
 0x36b   :  { %496 = vmax.xlane.f32.xlu1 %v495_v30 }
 0x36f   :  { %499 = vmax.xlane.f32.xlu1 %v498_v58 }
 0x3cc   :  { %v943_v4 = vpop.xlane.xlu1 %942 }
 0x3cd   :  { %v963_v62 = vsub.f32 %v3989_v46, %v943_v4 }
 0x3cf   :  { %v972_v52 = vmul.f32 1.442695, %v963_v62 }
 0x3d0   :  { %v940_v31 = vpop.xlane.xlu1 %939 }
 0x3d1   :  { %v962_v27 = vsub.f32 %v930_v61, %v940_v31 }
 0x3d3   :  { %v970_v59 = vmul.f32 1.442695, %v962_v27 }
 0x3d4   :  { %v949_v33 = vpop.xlane.xlu1 %948 }
 0x3d5   :  { %3442 = vpow2.f32 %v970_v59  ;;  %v965_v36 = vsub.f32 %v3994_v0, %v949_v33  ;;  %v3415_v59 = vld [vmem:[%s4542_s7 + $0x10] sm:$0xff]  }
 0x3d6   :  { %3444 = vpow2.f32 %v972_v52 }
 0x3d7   :  { %v976_v60 = vmul.f32 1.442695, %v965_v36 }
 0x3d8   :  { %v946_v32 = vpop.xlane.xlu1 %945 }
 0x3d9   :  { %v964_v42 = vsub.f32 %v932_v24, %v946_v32 }
 0x3db   :  { %v974_v30 = vmul.f32 1.442695, %v964_v42 }
 0x3dc   :  { %v955_v34 = vpop.xlane.xlu1 %954 }
 0x3dd   :  { %3446 = vpow2.f32 %v974_v30  ;;  %v967_v58 = vsub.f32 %v3999_v25, %v955_v34 }
 0x3de   :  { %3448 = vpow2.f32 %v976_v60 }
 0x3df   :  { %v980_v4 = vmul.f32 1.442695, %v967_v58 }
 0x3e0   :  { %v952_v26 = vpop.xlane.xlu1 %951 }
 0x3e1   :  { %v966_v46 = vsub.f32 %v4003_v54, %v952_v26 }
 0x3e2   :  { %v3443_v61 = vpop.eup %3442 }
 0x3e3   :  { %v3445_v52 = vpop.eup %3444  ;;  %v978_v33 = vmul.f32 1.442695, %v966_v46  ;;  %3190 = vmatprep.mubr.msk.f32.mxu1 %vm319_vm1, %v3443_v61  ;;  %3210 = vmatprep.mubr.msk.f32.mxu0 %vm319_vm1, %v3443_v61 }
 0x3e4   :  { %3191 = vmatmul.mubr.msk.f32.vlgmr.msra.gmra.mxu1 %vm319_vm1, %v3445_v52  ;;  %3211 = vmatmul.mubr.msk.f32.vlgmr.msra.gmra.mxu0 %vm319_vm1, %v3445_v52  ;;  %v958_v24 = vpop.xlane.xlu1 %957 }
 0x3e5   :  { %3450 = vpow2.f32 %v978_v33  ;;  %3223 = vmatpush3.bf16.msra.mxu1 %v3414_v50  ;;  %v968_v25 = vsub.f32 %v4007_v28, %v958_v24 }
 0x3e6   :  { %3452 = vpow2.f32 %v980_v4  ;;  %3224 = vmatprep.subr.bf16.mxu1 %v3415_v59 }
 0x3e7   :  { %v982_v26 = vmul.f32 1.442695, %v968_v25 }
 0x3e8   :  { %v961_v32 = vpop.xlane.xlu1 %960 }
 0x3e9   :  { %3454 = vpow2.f32 %v982_v26  ;;  %3225 = vmatpush3.bf16.msra.mxu1 %v3415_v59  ;;  %v969_v34 = vsub.f32 %v4013_v2, %v961_v32 }
 0x3ea   :  { %v3447_v36 = vpop.eup %3446  ;;  %3238 = vmatprep.subr.mxu1 %v3982_v10 }
 0x3eb   :  { %v3449_v0 = vpop.eup %3448  ;;  %v984_v54 = vmul.f32 1.442695, %v969_v34  ;;  %3193 = vmatprep.mubr.msk.f32.mxu1 %vm319_vm1, %v3447_v36  ;;  %3213 = vmatprep.mubr.msk.f32.mxu0 %vm319_vm1, %v3447_v36 }
 0x3ec   :  { %3194 = vmatmul.mubr.msk.f32.gmra.mxu1 %vm319_vm1, %v3449_v0  ;;  %3214 = vmatmul.mubr.msk.f32.gmra.mxu0 %vm319_vm1, %v3449_v0  ;;  %v491_v28 = vpop.xlane.xlu1 %490 }
 0x3ed   :  { %3456 = vpow2.f32 %v984_v54  ;;  %v501_v50 = vsub.f32 %v4032_v37, %v491_v28 }
 0x3ef   :  { %v505_v60 = vmul.f32 1.442695, %v501_v50 }
 0x3f0   :  { %v494_v62 = vpop.xlane.xlu1 %493 }
 0x3f1   :  { %3458 = vpow2.f32 %v505_v60  ;;  %v502_v2 = vsub.f32 %v4054_v56, %v494_v62 }
 0x3f2   :  { %v3451_v31 = vpop.eup %3450 }
 0x3f3   :  { %v3453_v27 = vpop.eup %3452  ;;  %v507_v42 = vmul.f32 1.442695, %v502_v2  ;;  %3196 = vmatprep.mubr.msk.f32.mxu1 %vm319_vm1, %v3451_v31  ;;  %3216 = vmatprep.mubr.msk.f32.mxu0 %vm319_vm1, %v3451_v31 }
 0x3f4   :  { %3197 = vmatmul.mubr.msk.f32.gmra.mxu1 %vm319_vm1, %v3453_v27  ;;  %3217 = vmatmul.mubr.msk.f32.gmra.mxu0 %vm319_vm1, %v3453_v27  ;;  %v497_v30 = vpop.xlane.xlu1 %496 }
 0x3f5   :  { %3460 = vpow2.f32 %v507_v42  ;;  %v503_v37 = vsub.f32 %v4063_v29, %v497_v30 }
 0x3f6   :  { %v3455_v58 = vpop.eup %3454 }
 0x3f7   :  { %v509_v46 = vmul.f32 1.442695, %v503_v37  ;;  %3199 = vmatprep.mubr.msk.f32.mxu1 %vm319_vm1, %v3455_v58  ;;  %3219 = vmatprep.mubr.msk.f32.mxu0 %vm319_vm1, %v3455_v58 }
 0x3f8   :  { %v500_v56 = vpop.xlane.xlu1 %499 }
 0x3f9   :  { %3462 = vpow2.f32 %v509_v46  ;;  %v504_v61 = vsub.f32 %v4073_v48, %v500_v56 }
 0x3fa   :  { %v3457_v4 = vpop.eup %3456 }
 0x3fb   :  { %v511_v59 = vmul.f32 1.442695, %v504_v61  ;;  %3200 = vmatmul.mubr.msk.f32.gmra.mxu1 %vm319_vm1, %v3457_v4  ;;  %3220 = vmatmul.mubr.msk.f32.gmra.mxu0 %vm319_vm1, %v3457_v4 }
 0x3fd   :  { %3464 = vpow2.f32 %v511_v59 }
 0x3fe   :  { %v4107_v52 = vpop.eup %3458 }
 0x3ff   :  { %v513_v29 = vsel %vm120_vm0, %v4107_v52, 0.0 }
 0x400   :  { %514 = vadd.xlane.f32.xlu1 %v513_v29 }
 0x402   :  { %v4111_v33 = vpop.eup %3460 }
 0x403   :  { %v516_v24 = vsel %vm120_vm0, %v4111_v33, 0.0 }
 0x404   :  { %517 = vadd.xlane.f32.xlu1 %v516_v24 }
 0x406   :  { %v4115_v48 = vpop.eup %3462 }
 0x407   :  { %v519_v25 = vsel %vm120_vm0, %v4115_v48, 0.0 }
 0x408   :  { %520 = vadd.xlane.f32.xlu1 %v519_v25 }
 0x40a   :  { %v4119_v26 = vpop.eup %3464 }
 0x40b   :  { %v522_v32 = vsel %vm120_vm0, %v4119_v26, 0.0 }
 0x40c   :  { %523 = vadd.xlane.f32.xlu0 %v522_v32 }
 0x419   :  { %1796 = vrot.lane.b32.xlu1 %v3688_v21, %s3580_s12  ;;  %v4142_v21 = vld [vmem:[%s4542_s7 + $0x8] sm:$0xff]  }
 0x41a   :  { %3230 = vmatprep.subr.bf16.mxu0 %v4142_v21 }
 0x41b   :  { %3231 = vmatpush3.bf16.msra.mxu0 %v4142_v21 }
 0x41d   :  { %1798 = vrot.lane.b32.xlu1 %v3692_v23, %s3580_s12 }
 0x421   :  { %1800 = vrot.lane.b32.xlu1 %v3686_v20, %s3580_s12  ;;  %v4149_v20 = vld [vmem:[%s4542_s7] sm:$0xff]  }
 0x422   :  { %3232 = vmatprep.subr.bf16.mxu0 %v4149_v20 }
 0x423   :  { %3233 = vmatpush3.bf16.msra.mxu0 %v4149_v20 }
 0x425   :  { %1802 = vrot.lane.b32.xlu1 %v3690_v22, %s3580_s12 }
 0x429   :  { %1760 = vrot.lane.b32.xlu1 %v3766_v51, %s3580_s12 }
 0x42d   :  { %1762 = vrot.lane.b32.xlu1 %v3772_v53, %s3580_s12 }
 0x431   :  { %1764 = vrot.lane.b32.xlu1 %v3778_v55, %s3580_s12 }
 0x435   :  { %1766 = vrot.lane.b32.xlu1 %v3784_v57, %s3580_s12 }
 0x489   :  { %v515_v22 = vpop.xlane.xlu1 %514 }
 0x48d   :  { %v518_v23 = vpop.xlane.xlu1 %517 }
 0x491   :  { %v521_v51 = vpop.xlane.xlu1 %520 }
 0x495   :  { %v4153_v53 = vpop.permute.xlu1 %1796 }
 0x499   :  { %v4155_v55 = vpop.permute.xlu1 %1798 }
 0x49d   :  { %v4157_v57 = vpop.permute.xlu1 %1800 }
 0x4a1   :  { %v4159_v34 = vpop.permute.xlu1 %1802 }
 0x4a4   :  { %v3212_v36 = vpop.f32.mrf.mxu0  ;;  %v3192_v42 = vpop.f32.mrf.mxu1 }
 0x4a5   :  { %3466 = vrcp.f32 %v3212_v36  ;;  %v1761_v0 = vpop.permute.xlu1 %1760 }
 0x4a6   :  { %v1205_v54 = vpop.f32.mrf.mxu0  ;;  %v1772_v28 = vsel %vm319_vm1, %v1761_v0, 0.0  ;;  %v1088_v56 = vpop.f32.mrf.mxu1 }
 0x4a7   :  { %3468 = vrcp.f32 %v1205_v54  ;;  %1773 = vadd.xlane.f32.xlu1 %v1772_v28 }
 0x4a9   :  { %v1763_v50 = vpop.permute.xlu1 %1762 }
 0x4aa   :  { %v1775_v60 = vsel %vm319_vm1, %v1763_v50, 0.0 }
 0x4ab   :  { %1776 = vadd.xlane.f32.xlu0 %v1775_v60 }
 0x4ac   :  { %v3215_v62 = vpop.f32.mrf.mxu0  ;;  %v3195_v25 = vpop.f32.mrf.mxu1 }
 0x4ad   :  { %3470 = vrcp.f32 %v3215_v62  ;;  %v1765_v2 = vpop.permute.xlu1 %1764 }
 0x4ae   :  { %v1215_v31 = vpop.f32.mrf.mxu0  ;;  %v1778_v27 = vsel %vm319_vm1, %v1765_v2, 0.0  ;;  %v1098_v54 = vpop.f32.mrf.mxu1 }
 0x4af   :  { %3472 = vrcp.f32 %v1215_v31  ;;  %1779 = vadd.xlane.f32.xlu0 %v1778_v27 }
 0x4b1   :  { %v1767_v30 = vpop.permute.xlu1 %1766 }
 0x4b2   :  { %v3467_v37 = vpop.eup %3466  ;;  %v1781_v58 = vsel %vm319_vm1, %v1767_v30, 0.0 }
 0x4b3   :  { %1782 = vadd.xlane.f32.xlu0 %v1781_v58  ;;  %v1247_v59 = vmul.f32 %v3467_v37, %v3192_v42 }
 0x4b4   :  { %v3469_v46 = vpop.eup %3468  ;;  %v3218_v61 = vpop.f32.mrf.mxu0 }
 0x4b5   :  { %3474 = vrcp.f32 %v3218_v61  ;;  %v1245_v4 = vmul.f32 %v3469_v46, %v1088_v56  ;;  %v3198_v2 = vpop.f32.mrf.mxu1 }
 0x4b6   :  { %v1225_v29 = vpop.f32.mrf.mxu0 }
 0x4b7   :  { %3476 = vrcp.f32 %v1225_v29  ;;  %v1260_v24 = vpack.c.bf16 %v1247_v59, %v1245_v4  ;;  %v1108_v27 = vpop.f32.mrf.mxu1 }
 0x4b8   :  { %1547 = vrot.lane.b32.xlu1 %v3730_v39, %s3580_s12 }
 0x4b9   :  { %3234 = vmatprep.mubr.msk.bf16.mxu0 %vm120_vm0, %v1260_v24 }
 0x4ba   :  { %v3471_v32 = vpop.eup %3470 }
 0x4bb   :  { %v3221_v36 = vpop.f32.mrf.mxu0  ;;  %v1251_v28 = vmul.f32 %v3471_v32, %v3195_v25  ;;  %v3201_v37 = vpop.f32.mrf.mxu1 }
 0x4bc   :  { %v3473_v0 = vpop.eup %3472  ;;  %3478 = vrcp.f32 %v3221_v36  ;;  %1503 = vrot.lane.b32.xlu1 %v3742_v43, %s3580_s12  ;;  %v524_v43 = vpop.xlane.xlu0 %523 }
 0x4bd   :  { %v1249_v50 = vmul.f32 %v3473_v0, %v1098_v54  ;;  %v1235_v60 = vpop.f32.mrf.mxu0 }
 0x4be   :  { %3480 = vrcp.f32 %v1235_v60 }
 0x4bf   :  { %3482 = vrcp.f32 %v515_v22  ;;  %v1261_v62 = vpack.c.bf16 %v1251_v28, %v1249_v50  ;;  %v1118_v22 = vpop.f32.mrf.mxu1 }
 0x4c0   :  { %1507 = vrot.lane.b32.xlu1 %v3754_v47, %s3580_s12  ;;  %3484 = vrcp.f32 %v518_v23 }
 0x4c1   :  { %3235 = vmatmul.mubr.msk.bf16.vlgmr.msra.gmra.mxu0 %vm120_vm0, %v1261_v62  ;;  %3486 = vrcp.f32 %v521_v51 }
 0x4c2   :  { %v3475_v39 = vpop.eup %3474  ;;  %3488 = vrcp.f32 %v524_v43 }
 0x4c3   :  { %v1255_v30 = vmul.f32 %v3475_v39, %v3198_v2 }
 0x4c4   :  { %v3477_v31 = vpop.eup %3476 }
 0x4c5   :  { %v1253_v42 = vmul.f32 %v3477_v31, %v1108_v27 }
 0x4c7   :  { %v1262_v58 = vpack.c.bf16 %v1255_v30, %v1253_v42 }
 0x4c9   :  { %v3479_v46 = vpop.eup %3478  ;;  %3226 = vmatprep.mubr.msk.bf16.mxu1 %vm120_vm0, %v1262_v58  ;;  %1549 = vrot.lane.b32.xlu0 %v3718_v35, %s3580_s12 }
 0x4ca   :  { %v1259_v61 = vmul.f32 %v3479_v46, %v3201_v37 }
 0x4cb   :  { %v3481_v47 = vpop.eup %3480 }
 0x4cc   :  { %v3483_v56 = vpop.eup %3482  ;;  %v1257_v4 = vmul.f32 %v3481_v47, %v1118_v22 }
 0x4cd   :  { %1545 = vrot.lane.b32.xlu0 %v3726_v38, %s3580_s12  ;;  %v526_v51 = vmul.f32 %v3483_v56, %v4107_v52  ;;  %v3485_v35 = vpop.eup %3484 }
 0x4ce   :  { %v1263_v23 = vpack.c.bf16 %v1259_v61, %v1257_v4  ;;  %v3487_v59 = vpop.eup %3486  ;;  %v528_v38 = vmul.f32 %v3485_v35, %v4111_v33 }
 0x4cf   :  { %v3489_v52 = vpop.eup %3488 }
 0x4d0   :  { %3227 = vmatmul.mubr.msk.bf16.vlgmr.msra.gmra.mxu1 %vm120_vm0, %v1263_v23 }
 0x4d1   :  { %3239 = vmatpush3.msra.mxu1 %v3982_v10  ;;  %3246 = vmatprep.mubr.msk.f32.mxu1 %vm120_vm0, %v526_v51 }
 0x4d2   :  { %3240 = vmatprep.subr.mxu1 %v3978_v7  ;;  %1543 = vrot.lane.b32.xlu0 %v3736_v41, %s3580_s12  ;;  %v530_v41 = vmul.f32 %v3487_v59, %v4115_v48 }
 0x4d3   :  { %3241 = vmatpush3.msra.mxu1 %v3978_v7 }
 0x4d4   :  { %3242 = vmatprep.subr.mxu1 %v3984_v14 }
 0x4d5   :  { %3243 = vmatpush3.msra.mxu1 %v3984_v14 }
 0x4d6   :  { %3244 = vmatprep.subr.mxu1 %v3980_v9  ;;  %1505 = vrot.lane.b32.xlu0 %v3748_v45, %s3580_s12  ;;  %v532_v45 = vmul.f32 %v3489_v52, %v4119_v26 }
 0x4d7   :  { %3245 = vmatpush3.msra.mxu1 %v3980_v9 }
 0x4d8   :  { %3266 = vmatprep.subr.mxu1 %v3806_v63  ;;  %3247 = vmatmul.mubr.msk.f32.vlgmr.msra.gmra.mxu1 %vm120_vm0, %v528_v38 }
 0x4d9   :  { %3267 = vmatpush3.msra.mxu1 %v3806_v63  ;;  %3249 = vmatprep.mubr.msk.f32.mxu1 %vm120_vm0, %v530_v41 }
 0x4da   :  { %3268 = vmatprep.subr.mxu1 %v3816_v6  ;;  %1509 = vrot.lane.b32.xlu0 %v3760_v49, %s3580_s12 }
 0x4db   :  { %3269 = vmatpush3.msra.mxu1 %v3816_v6 }
 0x4dc   :  { %3270 = vmatprep.subr.mxu1 %v3824_v8  ;;  %3250 = vmatmul.mubr.msk.f32.gmra.mxu1 %vm120_vm0, %v532_v45 }
 0x4dd   :  { %3271 = vmatpush3.msra.mxu1 %v3824_v8  ;;  %3282 = vmatprep.mubr.msk.f32.mxu1 %vm319_vm1, %v4153_v53 }
 0x4de   :  { %3272 = vmatprep.subr.mxu1 %v3833_v11 }
 0x4df   :  { %3273 = vmatpush3.msra.mxu1 %v3833_v11 }
 0x4e0   :  { %3274 = vmatprep.subr.mxu1 %v3841_v13 }
 0x4e1   :  { %3275 = vmatpush3.msra.mxu1 %v3841_v13 }
 0x4e2   :  { %3276 = vmatprep.subr.mxu1 %v3851_v15 }
 0x4e3   :  { %3277 = vmatpush3.msra.mxu1 %v3851_v15 }
 0x4e4   :  { %3278 = vmatprep.subr.mxu1 %v3858_v40 }
 0x4e5   :  { %3279 = vmatpush3.msra.mxu1 %v3858_v40 }
 0x4e6   :  { %3280 = vmatprep.subr.mxu1 %v3866_v44 }
 0x4e7   :  { %3281 = vmatpush3.msra.mxu1 %v3866_v44 }
 0x4e8   :  { %3283 = vmatmul.mubr.msk.f32.vlgmr.msra.gmra.mxu1 %vm319_vm1, %v4155_v55 }
 0x4e9   :  { %3285 = vmatprep.mubr.msk.f32.mxu1 %vm319_vm1, %v4157_v57 }
 0x4ec   :  { %3286 = vmatmul.mubr.msk.f32.gmra.mxu1 %vm319_vm1, %v4159_v34 }
 0x530   :  { %v1774_v49 = vpop.xlane.xlu1 %1773 }
 0x531   :  { %v1784_v63 = vmax.f32 %v1774_v49, 1e-24 }
 0x533   :  { %3490 = vrsqrt.f32 %v1784_v63 }
 0x534   :  { %v1777_v6 = vpop.xlane.xlu0 %1776 }
 0x535   :  { %v1785_v8 = vmax.f32 %v1777_v6, 1e-24 }
 0x537   :  { %3492 = vrsqrt.f32 %v1785_v8 }
 0x538   :  { %v1780_v11 = vpop.xlane.xlu0 %1779 }
 0x539   :  { %v1786_v13 = vmax.f32 %v1780_v11, 1e-24 }
 0x53b   :  { %3494 = vrsqrt.f32 %v1786_v13 }
 0x53c   :  { %v1783_v15 = vpop.xlane.xlu0 %1782 }
 0x53d   :  { %v1787_v40 = vmax.f32 %v1783_v15, 1e-24 }
 0x53f   :  { %3496 = vrsqrt.f32 %v1787_v40 }
 0x540   :  { %v3491_v44 = vpop.eup %3490  ;;  %v1550_v29 = vpop.permute.xlu0 %1549 }
 0x541   :  { %v1792_v33 = vmul.f32 %v3491_v44, %v3680_v17  ;;  %v1548_v17 = vpop.permute.xlu1 %1547 }
 0x542   :  { %v1561_v32 = vsel %vm319_vm1, %v1548_v17, 0.0 }
 0x543   :  { %2010 = vrot.lane.b32.xlu1 %v1792_v33, %s3580_s12 }
 0x544   :  { %v3493_v48 = vpop.eup %3492  ;;  %v1546_v24 = vpop.permute.xlu0 %1545 }
 0x545   :  { %v1793_v26 = vmul.f32 %v3493_v48, %v3684_v19  ;;  %v1564_v19 = vsel %vm319_vm1, %v1550_v29, 0.0  ;;  %v1504_v36 = vpop.permute.xlu1 %1503 }
 0x547   :  { %2012 = vrot.lane.b32.xlu0 %v1793_v26, %s3580_s12 }
 0x548   :  { %v3495_v53 = vpop.eup %3494  ;;  %v1544_v25 = vpop.permute.xlu0 %1543 }
 0x549   :  { %v1794_v55 = vmul.f32 %v3495_v53, %v3678_v16  ;;  %v1558_v16 = vsel %vm319_vm1, %v1546_v24, 0.0  ;;  %v1555_v54 = vsel %vm319_vm1, %v1544_v25, 0.0  ;;  %v1508_v28 = vpop.permute.xlu1 %1507 }
 0x54a   :  { %v1521_v62 = vsel %vm319_vm1, %v1508_v28, 0.0 }
 0x54b   :  { %2014 = vrot.lane.b32.xlu1 %v1794_v55, %s3580_s12 }
 0x54c   :  { %v3497_v57 = vpop.eup %3496  ;;  %v1506_v0 = vpop.permute.xlu0 %1505 }
 0x54d   :  { %v1795_v34 = vmul.f32 %v3497_v57, %v3682_v18  ;;  %v1515_v18 = vsel %vm319_vm1, %v1504_v36, 0.0  ;;  %v1518_v50 = vsel %vm319_vm1, %v1506_v0, 0.0 }
 0x54f   :  { %2016 = vrot.lane.b32.xlu0 %v1795_v34, %s3580_s12 }
 0x550   :  { %v1510_v60 = vpop.permute.xlu0 %1509 }
 0x551   :  { %v1524_v2 = vsel %vm319_vm1, %v1510_v60, 0.0 }
 0x56e   :  { %1562 = vadd.xlane.f32.xlu0 %v1561_v32  ;;  %v4579_v32 = vld [vmem:[#allocation12_spill] sm:$0xff] }
 0x56f   :  { %1565 = vadd.xlane.f32.xlu1 %v1564_v19 }
 0x572   :  { %1559 = vadd.xlane.f32.xlu0 %v1558_v16 }
 0x573   :  { %1556 = vadd.xlane.f32.xlu1 %v1555_v54  ;;  %v4580_v54 = vld [vmem:[#allocation10_spill] sm:$0xff] }
 0x576   :  { %1516 = vadd.xlane.f32.xlu0 %v1515_v18 }
 0x577   :  { %1519 = vadd.xlane.f32.xlu1 %v1518_v50 }
 0x57a   :  { %1522 = vadd.xlane.f32.xlu0 %v1521_v62  ;;  %v4581_v62 = vld [vmem:[#allocation13_spill] sm:$0xff] }
 0x57b   :  { %1525 = vadd.xlane.f32.xlu1 %v1524_v2 }
 0x581   :  { %v3236_v39 = vpop.f32.mrf.mxu0 }
 0x583   :  { %v1383_v31 = vpop.f32.mrf.mxu0 }
 0x585   :  { %v3237_v42 = vpop.f32.mrf.mxu0 }
 0x587   :  { %v1386_v37 = vpop.f32.mrf.mxu0 }
 0x590   :  { %v3228_v27 = vpop.f32.mrf.mxu1 }
 0x591   :  { %v1392_v35 = vadd.f32 %v3236_v39, %v3228_v27 }
 0x592   :  { %v1316_v30 = vpop.f32.mrf.mxu1 }
 0x593   :  { %v1384_v22 = vadd.f32 %v1383_v31, %v1316_v30  ;;  %v4582_v31 = vld [vmem:[#allocation11_spill] sm:$0xff] }
 0x594   :  { %v3229_v43 = vpop.f32.mrf.mxu1  ;;  %v4583_v30 = vld [vmem:[#allocation7_spill] sm:$0xff] }
 0x595   :  { %v1395_v4 = vadd.f32 %v3237_v42, %v3229_v43 }
 0x596   :  { %v1319_v58 = vpop.f32.mrf.mxu1 }
 0x597   :  { %v1387_v46 = vadd.f32 %v1386_v37, %v1319_v58  ;;  %v4584_v58 = vld [vmem:[#allocation9_spill] sm:$0xff] }
 0x598   :  { %v3248_v47 = vpop.f32.mrf.mxu1 }
 0x599   :  { %v1482_v56 = vadd.f32 %v3248_v47, %v1387_v46 }
 0x59a   :  { %v1476_v61 = vpop.f32.mrf.mxu1 }
 0x59b   :  { %1496 = vst.msk [vmem:[%s4543_s8 + $0x8] sm:$0xff] %vm319_vm1, %v1482_v56  ;;  %v1477_v23 = vadd.f32 %v1476_v61, %v1384_v22  ;;  %v4585_v22 = vld [vmem:[#allocation6_spill] sm:$0xff] }
 0x59c   :  { %v3251_v51 = vpop.f32.mrf.mxu1 }
 0x59d   :  { %1495 = vst.msk [vmem:[%s4543_s8] sm:$0xff] %vm319_vm1, %v1477_v23  ;;  %v1492_v59 = vadd.f32 %v3251_v51, %v1395_v4  ;;  %v4586_v4 = vld [vmem:[#allocation8_spill] sm:$0xff]  ;;  %v4587_v51 = vld [vmem:[#allocation3_spill] sm:$0xff] }
 0x59e   :  { %v1486_v38 = vpop.f32.mrf.mxu1 }
 0x59f   :  { %1498 = vst.msk [vmem:[%s4543_s8 + $0x18] sm:$0xff] %vm319_vm1, %v1492_v59  ;;  %v1487_v52 = vadd.f32 %v1486_v38, %v1392_v35  ;;  %v4588_v35 = vld [vmem:[#allocation5_spill] sm:$0xff]  ;;  %v4589_v38 = vld [vmem:[#allocation2_spill] sm:$0xff] }
 0x5a1   :  { %1497 = vst.msk [vmem:[%s4543_s8 + $0x10] sm:$0xff] %vm319_vm1, %v1487_v52 }
 0x5a8   :  { %v3284_v41 = vpop.f32.mrf.mxu1 }
 0x5a9   :  { %v1898_v11 = vmul.f32 %v3284_v41, %v3933_v5 }
 0x5aa   :  { %v1878_v45 = vpop.f32.mrf.mxu1 }
 0x5ab   :  { %v1897_v13 = vmul.f32 %v1878_v45, %v3939_v12  ;;  %v4578_v12 = vld [vmem:[#allocation4_spill] sm:$0xff] }
 0x5ac   :  { %v3287_v49 = vpop.f32.mrf.mxu1 }
 0x5ad   :  { %v1900_v63 = vmul.f32 %v3287_v49, %v3922_v1 }
 0x5ae   :  { %v1888_v6 = vpop.f32.mrf.mxu1 }
 0x5af   :  { %v1899_v8 = vmul.f32 %v1888_v6, %v3927_v3  ;;  %3310 = vmatprep.subr.mxu1 %v1900_v63 }
 0x5b0   :  { %3311 = vmatpush3.msra.mxu1 %v1900_v63 }
 0x5b1   :  { %3312 = vmatprep.subr.mxu1 %v1899_v8 }
 0x5b2   :  { %3313 = vmatpush3.msra.mxu1 %v1899_v8 }
 0x5b3   :  { %3314 = vmatprep.subr.mxu1 %v1898_v11 }
 0x5b4   :  { %3315 = vmatpush3.msra.mxu1 %v1898_v11 }
 0x5b5   :  { %3316 = vmatprep.subr.mxu1 %v1897_v13  ;;  %v2011_v15 = vpop.permute.xlu1 %2010 }
 0x5b6   :  { %3317 = vmatpush3.msra.mxu1 %v1897_v13  ;;  %2022 = vxpose.xlu0.b32.start [1/4] (short) (narrow) %v2011_v15, 64 }
 0x5b9   :  { %v2013_v40 = vpop.permute.xlu0 %2012 }
 0x5ba   :  { %2023 = vxpose.xlu0.b32.cont [2/4] (short) (narrow) %v2013_v40, 64 }
 0x5bd   :  { %v2015_v1 = vpop.permute.xlu1 %2014 }
 0x5be   :  { %2024 = vxpose.xlu0.b32.cont [3/4] (short) (narrow) %v2015_v1, 64  ;;  %v3562_v1 = vld [vmem:[%s4537_s2 + $0x38] sm:$0xff] }
 0x5c1   :  { %v2017_v44 = vpop.permute.xlu0 %2016 }
 0x5c2   :  { %2025 = vxpose.xlu0.b32.end [4/4] (short) (narrow) %v2017_v44, 64 }
 0x5f7   :  { %v1563_v3 = vpop.xlane.xlu0 %1562 }
 0x5f8   :  { %v1566_v33 = vpop.xlane.xlu1 %1565  ;;  %v1569_v48 = vmax.f32 %v1563_v3, 1e-24 }
 0x5f9   :  { %v1570_v5 = vmax.f32 %v1566_v33, 1e-24  ;;  %v3563_v33 = vld [vmem:[%s4537_s2 + $0x30] sm:$0xff] }
 0x5fb   :  { %3498 = vrsqrt.f32 %v1570_v5  ;;  %v1560_v26 = vpop.xlane.xlu0 %1559  ;;  %1907 = vrot.lane.b32.xlu0 %v4578_v12, %s3580_s12  ;;  %v3564_v5 = vld [vmem:[%s4537_s2 + $0x28] sm:$0xff] }
 0x5fc   :  { %3500 = vrsqrt.f32 %v1569_v48  ;;  %v1568_v53 = vmax.f32 %v1560_v26, 1e-24  ;;  %v1557_v55 = vpop.xlane.xlu1 %1556  ;;  %v3565_v26 = vld [vmem:[%s4537_s2 + $0x20] sm:$0xff] }
 0x5fd   :  { %v1567_v57 = vmax.f32 %v1557_v55, 1e-24  ;;  %v3567_v55 = vld [vmem:[%s4537_s2 + $0x10] sm:$0xff] }
 0x5fe   :  { %3502 = vrsqrt.f32 %v1568_v53  ;;  %v3566_v53 = vld [vmem:[%s4537_s2 + $0x18] sm:$0xff] }
 0x5ff   :  { %v1517_v34 = vpop.xlane.xlu0 %1516  ;;  %3504 = vrsqrt.f32 %v1567_v57 }
 0x600   :  { %v1527_v29 = vmax.f32 %v1517_v34, 1e-24  ;;  %v1520_v24 = vpop.xlane.xlu1 %1519  ;;  %v3568_v34 = vld [vmem:[%s4537_s2 + $0x8] sm:$0xff] }
 0x601   :  { %v1528_v25 = vmax.f32 %v1520_v24, 1e-24 }
 0x602   :  { %3506 = vrsqrt.f32 %v1527_v29  ;;  %v3569_v29 = vld [vmem:[%s4537_s2] sm:$0xff] }
 0x603   :  { %v1523_v0 = vpop.xlane.xlu0 %1522  ;;  %3508 = vrsqrt.f32 %v1528_v25  ;;  %v4342_v25 = vld [vmem:[%s4538_s3 + $0x10] sm:$0xff] }
 0x604   :  { %v1529_v16 = vmax.f32 %v1523_v0, 1e-24  ;;  %v1526_v50 = vpop.xlane.xlu1 %1525  ;;  %v4362_v0 = vld [vmem:[%s4538_s3] sm:$0xff] }
 0x605   :  { %v1530_v60 = vmax.f32 %v1526_v50, 1e-24 }
 0x606   :  { %3510 = vrsqrt.f32 %v1529_v16 }
 0x607   :  { %3512 = vrsqrt.f32 %v1530_v60 }
 0x608   :  { %v3499_v17 = vpop.eup %3498 }
 0x609   :  { %v1578_v19 = vmul.f32 %v3499_v17, %v4579_v32  ;;  %v3501_v36 = vpop.eup %3500  ;;  %v4333_v17 = vld [vmem:[%s4538_s3 + $0x18] sm:$0xff] }
 0x60a   :  { %v1577_v18 = vmul.f32 %v3501_v36, %v4580_v54  ;;  %v4353_v36 = vld [vmem:[%s4538_s3 + $0x8] sm:$0xff]  ;;  %v3574_v54 = vld [vmem:[%s4539_s6] ss:$0 sm:$0xff] }
 0x60b   :  { %1601 = vrot.lane.b32.xlu1 %v1578_v19, %s3580_s12  ;;  %v3503_v28 = vpop.eup %3502 }
 0x60c   :  { %v1576_v2 = vmul.f32 %v3503_v28, %v4581_v62  ;;  %v3505_v39 = vpop.eup %3504 }
 0x60d   :  { %v1575_v27 = vmul.f32 %v3505_v39, %v4582_v31 }
 0x60f   :  { %1599 = vrot.lane.b32.xlu1 %v1577_v18, %s3580_s12  ;;  %v3507_v42 = vpop.eup %3506 }
 0x610   :  { %v1535_v43 = vmul.f32 %v3507_v42, %v4583_v30  ;;  %v3509_v37 = vpop.eup %3508 }
 0x611   :  { %v1536_v46 = vmul.f32 %v3509_v37, %v4584_v58 }
 0x613   :  { %1597 = vrot.lane.b32.xlu1 %v1576_v2, %s3580_s12  ;;  %v3511_v47 = vpop.eup %3510 }
 0x614   :  { %v1537_v56 = vmul.f32 %v3511_v47, %v4585_v22  ;;  %v3513_v61 = vpop.eup %3512 }
 0x615   :  { %v1538_v23 = vmul.f32 %v3513_v61, %v4586_v4 }
 0x617   :  { %1595 = vrot.lane.b32.xlu1 %v1575_v27, %s3580_s12 }
 0x61b   :  { %1583 = vrot.lane.b32.xlu1 %v1535_v43, %s3580_s12 }
 0x61f   :  { %1585 = vrot.lane.b32.xlu1 %v1536_v46, %s3580_s12 }
 0x623   :  { %1587 = vrot.lane.b32.xlu1 %v1537_v56, %s3580_s12 }
 0x627   :  { %1589 = vrot.lane.b32.xlu1 %v1538_v23, %s3580_s12 }
 0x62b   :  { %1901 = vrot.lane.b32.xlu1 %v4587_v51, %s3580_s12 }
 0x62f   :  { %1903 = vrot.lane.b32.xlu1 %v4588_v35, %s3580_s12 }
 0x632   :  { %v2038_v59 = vpop.trf.xlu0 }
 0x633   :  { %1905 = vrot.lane.b32.xlu1 %v4589_v38, %s3580_s12  ;;  %3318 = vmatprep.mubr.msk.f32.mxu1 %vm120_vm0, %v2038_v59 }
 0x636   :  { %v2039_v52 = vpop.trf.xlu0 }
 0x637   :  { %3319 = vmatmul.mubr.msk.f32.vlgmr.msra.gmra.mxu1 %vm120_vm0, %v2039_v52  ;;  %v4590_v52 = vld [vmem:[#allocation14_spill] sm:$0xff] }
 0x63a   :  { %v2040_v41 = vpop.trf.xlu0 }
 0x63b   :  { %3321 = vmatprep.mubr.msk.f32.mxu1 %vm120_vm0, %v2040_v41 }
 0x63e   :  { %v2041_v45 = vpop.trf.xlu0 }
 0x63f   :  { %3322 = vmatmul.mubr.msk.f32.gmra.mxu1 %vm120_vm0, %v2041_v45  ;;  %v3575_v45 = vld [vmem:[%s4540_s4] sm:$0xff] }
 0x642   :  { %v2042_v49 = vpop.trf.xlu0 }
 0x643   :  { %3324 = vmatprep.mubr.msk.f32.mxu1 %vm120_vm0, %v2042_v49 }
 0x646   :  { %v2043_v63 = vpop.trf.xlu0 }
 0x647   :  { %3325 = vmatmul.mubr.msk.f32.gmra.mxu1 %vm120_vm0, %v2043_v63  ;;  %v4591_v63 = vld [vmem:[#allocation15_spill] sm:$0xff] }
 0x64a   :  { %v2044_v6 = vpop.trf.xlu0 }
 0x64b   :  { %3327 = vmatprep.mubr.msk.f32.mxu1 %vm120_vm0, %v2044_v6 }
 0x64e   :  { %v2045_v8 = vpop.trf.xlu0 }
 0x64f   :  { %3328 = vmatmul.mubr.msk.f32.gmra.mxu1 %vm120_vm0, %v2045_v8  ;;  %v4592_v8 = vld [vmem:[#allocation16_spill] sm:$0xff] }
 0x66d   :  { %v1908_v19 = vpop.permute.xlu0 %1907 }
 0x67d   :  { %v1602_v11 = vpop.permute.xlu1 %1601 }
 0x67e   :  { %3252 = vmatprep.subr.msk.mxu0 %vm319_vm1, %v1602_v11 }
 0x67f   :  { %3253 = vmatpush3.xpose.msk.msra.mxu0 %vm319_vm1, %v1602_v11 }
 0x681   :  { %v1600_v13 = vpop.permute.xlu1 %1599 }
 0x682   :  { %3254 = vmatprep.subr.msk.mxu0 %vm319_vm1, %v1600_v13 }
 0x683   :  { %3255 = vmatpush3.xpose.msk.msra.mxu0 %vm319_vm1, %v1600_v13 }
 0x685   :  { %v1598_v15 = vpop.permute.xlu1 %1597 }
 0x686   :  { %3256 = vmatprep.subr.msk.mxu0 %vm319_vm1, %v1598_v15 }
 0x687   :  { %3257 = vmatpush3.xpose.msk.msra.mxu0 %vm319_vm1, %v1598_v15 }
 0x689   :  { %v1596_v40 = vpop.permute.xlu1 %1595 }
 0x68a   :  { %3258 = vmatprep.subr.msk.mxu0 %vm319_vm1, %v1596_v40 }
 0x68b   :  { %3259 = vmatpush3.xpose.msk.msra.mxu0 %vm319_vm1, %v1596_v40 }
 0x68c   :  { %3288 = vmatprep.subr.mxu0 %v3562_v1 }
 0x68d   :  { %v1584_v44 = vpop.permute.xlu1 %1583 }
 0x68e   :  { %3260 = vmatprep.mubr.msk.f32.mxu0 %vm319_vm1, %v1584_v44 }
 0x691   :  { %v1586_v3 = vpop.permute.xlu1 %1585 }
 0x692   :  { %3261 = vmatmul.mubr.msk.f32.vlgmr.msra.gmra.mxu0 %vm319_vm1, %v1586_v3  ;;  %v3576_v3 = vld [vmem:[%s4540_s4 + $0x10] sm:$0xff] }
 0x693   :  { %3289 = vmatpush3.msra.mxu0 %v3562_v1  ;;  %v4593_v1 = vld [vmem:[#allocation17_spill] sm:$0xff] }
 0x694   :  { %3290 = vmatprep.subr.mxu0 %v3563_v33 }
 0x695   :  { %3291 = vmatpush3.msra.mxu0 %v3563_v33  ;;  %v1588_v48 = vpop.permute.xlu1 %1587 }
 0x696   :  { %3263 = vmatprep.mubr.msk.f32.mxu0 %vm319_vm1, %v1588_v48  ;;  %3292 = vmatprep.subr.mxu0 %v3564_v5 }
 0x697   :  { %3293 = vmatpush3.msra.mxu0 %v3564_v5  ;;  %v3577_v5 = vld [vmem:[%s4541_s5 + $0x10] sm:$0xff] }
 0x698   :  { %3294 = vmatprep.subr.mxu0 %v3565_v26 }
 0x699   :  { %3295 = vmatpush3.msra.mxu0 %v3565_v26  ;;  %v1590_v12 = vpop.permute.xlu1 %1589 }
 0x69a   :  { %3264 = vmatmul.mubr.msk.f32.gmra.mxu0 %vm319_vm1, %v1590_v12  ;;  %3296 = vmatprep.subr.mxu0 %v3566_v53  ;;  %v4594_v12 = vld [vmem:[#allocation18_spill] sm:$0xff] }
 0x69b   :  { %3297 = vmatpush3.msra.mxu0 %v3566_v53 }
 0x69c   :  { %3298 = vmatprep.subr.mxu0 %v3567_v55 }
 0x69d   :  { %3299 = vmatpush3.msra.mxu0 %v3567_v55  ;;  %v1902_v57 = vpop.permute.xlu1 %1901 }
 0x69e   :  { %3300 = vmatprep.subr.mxu0 %v3568_v34  ;;  %3304 = vmatprep.mubr.msk.f32.mxu0 %vm319_vm1, %v1902_v57 }
 0x69f   :  { %3301 = vmatpush3.msra.mxu0 %v3568_v34 }
 0x6a0   :  { %3302 = vmatprep.subr.mxu0 %v3569_v29 }
 0x6a1   :  { %3303 = vmatpush3.msra.mxu0 %v3569_v29  ;;  %v1904_v24 = vpop.permute.xlu1 %1903 }
 0x6a2   :  { %3305 = vmatmul.mubr.msk.f32.vlgmr.msra.gmra.mxu0 %vm319_vm1, %v1904_v24  ;;  %3350 = vmatprep.subr.msk.mxu0 %vm319_vm1, %v4333_v17 }
 0x6a3   :  { %3351 = vmatpush3.xpose.msk.msra.mxu0 %vm319_vm1, %v4333_v17 }
 0x6a4   :  { %3352 = vmatprep.subr.msk.mxu0 %vm319_vm1, %v4342_v25 }
 0x6a5   :  { %v1906_v32 = vpop.permute.xlu1 %1905 }
 0x6a6   :  { %3307 = vmatprep.mubr.msk.f32.mxu0 %vm319_vm1, %v1906_v32 }
 0x6a7   :  { %3308 = vmatmul.mubr.msk.f32.gmra.mxu0 %vm319_vm1, %v1908_v19 }
 0x6a8   :  { %3353 = vmatpush3.xpose.msk.msra.mxu0 %vm319_vm1, %v4342_v25 }
 0x6a9   :  { %3354 = vmatprep.subr.msk.mxu0 %vm319_vm1, %v4353_v36 }
 0x6ac   :  { %3355 = vmatpush3.xpose.msk.msra.mxu0 %vm319_vm1, %v4353_v36 }
 0x6ad   :  { %3356 = vmatprep.subr.msk.mxu0 %vm319_vm1, %v4362_v0 }
 0x6b0   :  { %3357 = vmatpush3.xpose.msk.msra.mxu0 %vm319_vm1, %v4362_v0 }
 0x6b1   :  { %3378 = vmatprep.subr.bf16.mxu0 %v4142_v21 }
 0x6f7   :  { %v3320_v16 = vpop.f32.mrf.mxu1 }
 0x6f8   :  { %v4372_v18 = vmul.f32 %v3574_v54, %v3320_v16 }
 0x6f9   :  { %v2144_v28 = vpop.f32.mrf.mxu1 }
 0x6fa   :  { %v4374_v50 = vmul.f32 %v3574_v54, %v2144_v28  ;;  %v2194_v60 = vsel %vm319_vm1, %v4372_v18, -inf }
 0x6fb   :  { %2195 = vmax.xlane.f32.xlu1 %v2194_v60 }
 0x6fc   :  { %v2191_v62 = vsel %vm319_vm1, %v4374_v50, -inf }
 0x6ff   :  { %v3323_v2 = vpop.f32.mrf.mxu1  ;;  %2192 = vmax.xlane.f32.xlu1 %v2191_v62 }
 0x700   :  { %v4380_v39 = vmul.f32 %v3574_v54, %v3323_v2 }
 0x701   :  { %v2154_v31 = vpop.f32.mrf.mxu1 }
 0x702   :  { %v4382_v27 = vmul.f32 %v3574_v54, %v2154_v31  ;;  %v2200_v42 = vsel %vm319_vm1, %v4380_v39, -inf }
 0x703   :  { %2201 = vmax.xlane.f32.xlu1 %v2200_v42 }
 0x704   :  { %v2197_v30 = vsel %vm319_vm1, %v4382_v27, -inf }
 0x707   :  { %v3326_v43 = vpop.f32.mrf.mxu1  ;;  %2198 = vmax.xlane.f32.xlu1 %v2197_v30 }
 0x708   :  { %v4388_v58 = vmul.f32 %v3574_v54, %v3326_v43 }
 0x709   :  { %v2164_v37 = vpop.f32.mrf.mxu1 }
 0x70a   :  { %v4390_v46 = vmul.f32 %v3574_v54, %v2164_v37  ;;  %v2206_v22 = vsel %vm319_vm1, %v4388_v58, -inf }
 0x70c   :  { %v2203_v47 = vsel %vm319_vm1, %v4390_v46, -inf }
 0x70d   :  { %2204 = vmax.xlane.f32.xlu1 %v2203_v47 }
 0x70f   :  { %v3329_v56 = vpop.f32.mrf.mxu1 }
 0x710   :  { %v4396_v61 = vmul.f32 %v3574_v54, %v3329_v56 }
 0x711   :  { %v2174_v4 = vpop.f32.mrf.mxu1  ;;  %2207 = vmax.xlane.f32.xlu1 %v2206_v22 }
 0x712   :  { %v4398_v23 = vmul.f32 %v3574_v54, %v2174_v4  ;;  %v2212_v51 = vsel %vm319_vm1, %v4396_v61, -inf }
 0x714   :  { %v2209_v35 = vsel %vm319_vm1, %v4398_v23, -inf }
 0x715   :  { %2210 = vmax.xlane.f32.xlu0 %v2209_v35  ;;  %2213 = vmax.xlane.f32.xlu1 %v2212_v51 }
 0x752   :  { %v3262_v59 = vpop.f32.mrf.mxu0 }
 0x753   :  { %v1705_v41 = vmul.f32 %v3262_v59, %v4590_v52 }
 0x754   :  { %v1685_v38 = vpop.f32.mrf.mxu0 }
 0x755   :  { %v1704_v49 = vmul.f32 %v3575_v45, %v1685_v38  ;;  %v4412_v11 = vadd.f32 %v1705_v41, %v4592_v8 }
 0x757   :  { %v4409_v6 = vadd.f32 %v1704_v49, %v4591_v63  ;;  %v1715_v48 = vsel %vm120_vm0, %v4412_v11, -inf }
 0x759   :  { %v1712_v13 = vsel %vm120_vm0, %v4409_v6, -inf }
 0x75a   :  { %1713 = vmax.xlane.f32.xlu1 %v1712_v13  ;;  %v3265_v15 = vpop.f32.mrf.mxu0 }
 0x75b   :  { %v1707_v44 = vmul.f32 %v3265_v15, %v4593_v1 }
 0x75c   :  { %v1695_v40 = vpop.f32.mrf.mxu0 }
 0x75d   :  { %v1706_v33 = vmul.f32 %v3576_v3, %v1695_v40  ;;  %v4428_v53 = vadd.f32 %v1707_v44, %v4594_v12 }
 0x75e   :  { %1716 = vmax.xlane.f32.xlu1 %v1715_v48 }
 0x75f   :  { %v4425_v26 = vadd.f32 %v3577_v5, %v1706_v33  ;;  %v1721_v29 = vsel %vm120_vm0, %v4428_v53, -inf }
 0x761   :  { %v1718_v55 = vsel %vm120_vm0, %v4425_v26, -inf }
 0x762   :  { %1719 = vmax.xlane.f32.xlu1 %v1718_v55  ;;  %v3306_v57 = vpop.f32.mrf.mxu0 }
 0x763   :  { %v2003_v54 = vmul.f32 %v4353_v36, %v3306_v57 }
 0x764   :  { %v1983_v34 = vpop.f32.mrf.mxu0 }
 0x765   :  { %v2002_v28 = vmul.f32 %v4362_v0, %v1983_v34 }
 0x766   :  { %1722 = vmax.xlane.f32.xlu1 %v1721_v29 }
 0x767   :  { %v3309_v24 = vpop.f32.mrf.mxu0 }
 0x768   :  { %v2005_v32 = vmul.f32 %v4333_v17, %v3309_v24  ;;  %v3578_v17 = vld [vmem:[%s4542_s7 + $0x18] sm:$0xff]  }
 0x769   :  { %v1993_v19 = vpop.f32.mrf.mxu0 }
 0x76a   :  { %v2004_v16 = vmul.f32 %v4342_v25, %v1993_v19  ;;  %3330 = vmatprep.subr.msk.mxu1 %vm319_vm1, %v2005_v32 }
 0x76b   :  { %3331 = vmatpush3.xpose.msk.msra.mxu1 %vm319_vm1, %v2005_v32 }
 0x76c   :  { %3332 = vmatprep.subr.msk.mxu1 %vm319_vm1, %v2004_v16 }
 0x76f   :  { %3333 = vmatpush3.xpose.msk.msra.mxu1 %vm319_vm1, %v2004_v16 }
 0x770   :  { %3334 = vmatprep.subr.msk.mxu1 %vm319_vm1, %v2003_v54 }
 0x773   :  { %3335 = vmatpush3.xpose.msk.msra.mxu1 %vm319_vm1, %v2003_v54 }
 0x774   :  { %3336 = vmatprep.subr.msk.mxu1 %vm319_vm1, %v2002_v28 }
 0x777   :  { %3337 = vmatpush3.xpose.msk.msra.mxu1 %vm319_vm1, %v2002_v28 }
 0x778   :  { %3370 = vmatprep.subr.bf16.mxu1 %v3578_v17 }
 0x784   :  { %v2196_v25 = vpop.xlane.xlu1 %2195 }
 0x785   :  { %v2216_v36 = vsub.f32 %v4372_v18, %v2196_v25 }
 0x787   :  { %v2225_v2 = vmul.f32 1.442695, %v2216_v36 }
 0x788   :  { %v2193_v60 = vpop.xlane.xlu1 %2192 }
 0x789   :  { %v2215_v62 = vsub.f32 %v4374_v50, %v2193_v60 }
 0x78b   :  { %v2223_v31 = vmul.f32 1.442695, %v2215_v62 }
 0x78c   :  { %v2202_v0 = vpop.xlane.xlu1 %2201 }
 0x78d   :  { %3514 = vpow2.f32 %v2223_v31  ;;  %v2218_v42 = vsub.f32 %v4380_v39, %v2202_v0 }
 0x78e   :  { %3516 = vpow2.f32 %v2225_v2 }
 0x78f   :  { %v2229_v37 = vmul.f32 1.442695, %v2218_v42 }
 0x790   :  { %v2199_v30 = vpop.xlane.xlu1 %2198 }
 0x791   :  { %v2217_v43 = vsub.f32 %v4382_v27, %v2199_v30 }
 0x793   :  { %v2227_v47 = vmul.f32 1.442695, %v2217_v43 }
 0x795   :  { %3518 = vpow2.f32 %v2227_v47 }
 0x796   :  { %3520 = vpow2.f32 %v2229_v37  ;;  %v2205_v22 = vpop.xlane.xlu1 %2204 }
 0x797   :  { %v2219_v18 = vsub.f32 %v4390_v46, %v2205_v22 }
 0x799   :  { %v2231_v56 = vmul.f32 1.442695, %v2219_v18 }
 0x79a   :  { %v3515_v4 = vpop.eup %3514  ;;  %v2208_v50 = vpop.xlane.xlu1 %2207 }
 0x79b   :  { %v3517_v51 = vpop.eup %3516  ;;  %3522 = vpow2.f32 %v2231_v56  ;;  %v2220_v35 = vsub.f32 %v4388_v58, %v2208_v50  ;;  %3338 = vmatprep.mubr.msk.f32.mxu1 %vm319_vm1, %v3515_v4  ;;  %3358 = vmatprep.mubr.msk.f32.mxu0 %vm319_vm1, %v3515_v4  ;;  %v3579_v58 = vld [vmem:[%s4542_s7 + $0x10] sm:$0xff]  }
 0x79c   :  { %3339 = vmatmul.mubr.msk.f32.vlgmr.msra.gmra.mxu1 %vm319_vm1, %v3517_v51  ;;  %3359 = vmatmul.mubr.msk.f32.vlgmr.msra.gmra.mxu0 %vm319_vm1, %v3517_v51 }
 0x79d   :  { %v2233_v39 = vmul.f32 1.442695, %v2220_v35  ;;  %3379 = vmatpush3.bf16.msra.mxu0 %v4142_v21  ;;  %3371 = vmatpush3.bf16.msra.mxu1 %v3578_v17 }
 0x79e   :  { %v2211_v27 = vpop.xlane.xlu0 %2210  ;;  %v2214_v46 = vpop.xlane.xlu1 %2213  ;;  %3380 = vmatprep.subr.bf16.mxu0 %v4149_v20  ;;  %3372 = vmatprep.subr.bf16.mxu1 %v3579_v58 }
 0x79f   :  { %3524 = vpow2.f32 %v2233_v39  ;;  %v2221_v59 = vsub.f32 %v4398_v23, %v2211_v27  ;;  %v2222_v38 = vsub.f32 %v4396_v61, %v2214_v46 }
 0x7a1   :  { %v2235_v52 = vmul.f32 1.442695, %v2221_v59  ;;  %v2237_v41 = vmul.f32 1.442695, %v2222_v38  ;;  %3381 = vmatpush3.bf16.msra.mxu0 %v4149_v20  ;;  %3373 = vmatpush3.bf16.msra.mxu1 %v3579_v58 }
 0x7a2   :  { %v3519_v21 = vpop.eup %3518 }
 0x7a3   :  { %v3521_v45 = vpop.eup %3520  ;;  %3526 = vpow2.f32 %v2235_v52  ;;  %3341 = vmatprep.mubr.msk.f32.mxu1 %vm319_vm1, %v3519_v21  ;;  %3361 = vmatprep.mubr.msk.f32.mxu0 %vm319_vm1, %v3519_v21 }
 0x7a4   :  { %3528 = vpow2.f32 %v2237_v41  ;;  %3342 = vmatmul.mubr.msk.f32.gmra.mxu1 %vm319_vm1, %v3521_v45  ;;  %3362 = vmatmul.mubr.msk.f32.gmra.mxu0 %vm319_vm1, %v3521_v45 }
 0x7a8   :  { %v3523_v23 = vpop.eup %3522 }
 0x7a9   :  { %3344 = vmatprep.mubr.msk.f32.mxu1 %vm319_vm1, %v3523_v23  ;;  %3364 = vmatprep.mubr.msk.f32.mxu0 %vm319_vm1, %v3523_v23 }
 0x7ac   :  { %v3525_v61 = vpop.eup %3524 }
 0x7ad   :  { %3345 = vmatmul.mubr.msk.f32.gmra.mxu1 %vm319_vm1, %v3525_v61  ;;  %3365 = vmatmul.mubr.msk.f32.gmra.mxu0 %vm319_vm1, %v3525_v61 }
 0x7b0   :  { %v3527_v20 = vpop.eup %3526 }
 0x7b1   :  { %v3529_v49 = vpop.eup %3528  ;;  %3347 = vmatprep.mubr.msk.f32.mxu1 %vm319_vm1, %v3527_v20  ;;  %3367 = vmatprep.mubr.msk.f32.mxu0 %vm319_vm1, %v3527_v20 }
 0x7b2   :  { %3348 = vmatmul.mubr.msk.f32.gmra.mxu1 %vm319_vm1, %v3529_v49  ;;  %3368 = vmatmul.mubr.msk.f32.gmra.mxu0 %vm319_vm1, %v3529_v49 }
 0x7e3   :  { %v1714_v63 = vpop.xlane.xlu1 %1713 }
 0x7e4   :  { %v1724_v8 = vsub.f32 %v4409_v6, %v1714_v63 }
 0x7e6   :  { %v1728_v13 = vmul.f32 1.442695, %v1724_v8 }
 0x7e7   :  { %v1717_v15 = vpop.xlane.xlu1 %1716 }
 0x7e8   :  { %3530 = vpow2.f32 %v1728_v13  ;;  %v1725_v40 = vsub.f32 %v4412_v11, %v1717_v15 }
 0x7ea   :  { %v1730_v1 = vmul.f32 1.442695, %v1725_v40 }
 0x7eb   :  { %v1720_v44 = vpop.xlane.xlu1 %1719 }
 0x7ec   :  { %3532 = vpow2.f32 %v1730_v1  ;;  %v1726_v3 = vsub.f32 %v4425_v26, %v1720_v44 }
 0x7ee   :  { %v1732_v33 = vmul.f32 1.442695, %v1726_v3 }
 0x7ef   :  { %v1723_v48 = vpop.xlane.xlu1 %1722 }
 0x7f0   :  { %3534 = vpow2.f32 %v1732_v33  ;;  %v1727_v5 = vsub.f32 %v4428_v53, %v1723_v48 }
 0x7f2   :  { %v1734_v12 = vmul.f32 1.442695, %v1727_v5 }
 0x7f4   :  { %3536 = vpow2.f32 %v1734_v12 }
 0x7f5   :  { %v4483_v55 = vpop.eup %3530 }
 0x7f6   :  { %v1736_v6 = vsel %vm120_vm0, %v4483_v55, 0.0 }
 0x7f7   :  { %1737 = vadd.xlane.f32.xlu1 %v1736_v6 }
 0x7f9   :  { %v4487_v57 = vpop.eup %3532 }
 0x7fa   :  { %v1739_v11 = vsel %vm120_vm0, %v4487_v57, 0.0 }
 0x7fb   :  { %1740 = vadd.xlane.f32.xlu1 %v1739_v11 }
 0x7fd   :  { %v4491_v26 = vpop.eup %3534 }
 0x7fe   :  { %v1742_v34 = vsel %vm120_vm0, %v4491_v26, 0.0 }
 0x7ff   :  { %1743 = vadd.xlane.f32.xlu1 %v1742_v34 }
 0x801   :  { %v4495_v53 = vpop.eup %3536 }
 0x802   :  { %v1745_v29 = vsel %vm120_vm0, %v4495_v53, 0.0 }
 0x803   :  { %1746 = vadd.xlane.f32.xlu0 %v1745_v29 }
 0x810   :  { %2625 = vrot.lane.b32.xlu1 %v3982_v10, %s3580_s12 }
 0x814   :  { %2621 = vrot.lane.b32.xlu1 %v3984_v14, %s3580_s12 }
 0x818   :  { %2619 = vrot.lane.b32.xlu1 %v3980_v9, %s3580_s12 }
 0x819   :  { %2623 = vrot.lane.b32.xlu0 %v3978_v7, %s3580_s12 }
 0x85c   :  { %v3360_v24 = vpop.f32.mrf.mxu0  ;;  %v3340_v54 = vpop.f32.mrf.mxu1 }
 0x85d   :  { %3538 = vrcp.f32 %v3360_v24 }
 0x85e   :  { %v2446_v32 = vpop.f32.mrf.mxu0  ;;  %v2341_v17 = vpop.f32.mrf.mxu1 }
 0x85f   :  { %3540 = vrcp.f32 %v2446_v32 }
 0x864   :  { %v3363_v19 = vpop.f32.mrf.mxu0  ;;  %v3343_v62 = vpop.f32.mrf.mxu1 }
 0x865   :  { %3542 = vrcp.f32 %v3363_v19 }
 0x866   :  { %v2456_v16 = vpop.f32.mrf.mxu0  ;;  %v2351_v0 = vpop.f32.mrf.mxu1 }
 0x867   :  { %3544 = vrcp.f32 %v2456_v16 }
 0x86a   :  { %v3539_v28 = vpop.eup %3538 }
 0x86b   :  { %v2488_v36 = vmul.f32 %v3539_v28, %v3340_v54 }
 0x86c   :  { %v3541_v10 = vpop.eup %3540 }
 0x86d   :  { %v3366_v25 = vpop.f32.mrf.mxu0  ;;  %v2486_v14 = vmul.f32 %v3541_v10, %v2341_v17  ;;  %v3346_v37 = vpop.f32.mrf.mxu1 }
 0x86e   :  { %3546 = vrcp.f32 %v3366_v25 }
 0x86f   :  { %v2466_v9 = vpop.f32.mrf.mxu0  ;;  %v2501_v60 = vpack.c.bf16 %v2488_v36, %v2486_v14  ;;  %v2361_v22 = vpop.f32.mrf.mxu1 }
 0x870   :  { %3548 = vrcp.f32 %v2466_v9 }
 0x871   :  { %3382 = vmatprep.mubr.msk.bf16.mxu0 %vm120_vm0, %v2501_v60 }
 0x872   :  { %v3543_v7 = vpop.eup %3542  ;;  %v3369_v2 = vpop.f32.mrf.mxu0 }
 0x873   :  { %3550 = vrcp.f32 %v3369_v2  ;;  %v2492_v30 = vmul.f32 %v3543_v7, %v3343_v62  ;;  %v3349_v4 = vpop.f32.mrf.mxu1 }
 0x874   :  { %v3545_v31 = vpop.eup %3544  ;;  %v2476_v42 = vpop.f32.mrf.mxu0 }
 0x875   :  { %v2490_v43 = vmul.f32 %v3545_v31, %v2351_v0  ;;  %3552 = vrcp.f32 %v2476_v42  ;;  %v2371_v58 = vpop.f32.mrf.mxu1 }
 0x877   :  { %v2502_v47 = vpack.c.bf16 %v2492_v30, %v2490_v43 }
 0x879   :  { %3383 = vmatmul.mubr.msk.bf16.vlgmr.msra.gmra.mxu0 %vm120_vm0, %v2502_v47 }
 0x87b   :  { %v3547_v18 = vpop.eup %3546 }
 0x87c   :  { %v2496_v51 = vmul.f32 %v3547_v18, %v3346_v37 }
 0x87d   :  { %v3549_v56 = vpop.eup %3548 }
 0x87e   :  { %v2494_v50 = vmul.f32 %v3549_v56, %v2361_v22 }
 0x880   :  { %v3551_v35 = vpop.eup %3550  ;;  %v1738_v39 = vpop.xlane.xlu1 %1737  ;;  %v2503_v27 = vpack.c.bf16 %v2496_v51, %v2494_v50 }
 0x881   :  { %3554 = vrcp.f32 %v1738_v39  ;;  %v2500_v59 = vmul.f32 %v3551_v35, %v3349_v4 }
 0x882   :  { %v3553_v46 = vpop.eup %3552  ;;  %3374 = vmatprep.mubr.msk.bf16.mxu1 %vm120_vm0, %v2503_v27 }
 0x883   :  { %v2498_v38 = vmul.f32 %v3553_v46, %v2371_v58 }
 0x884   :  { %v1741_v52 = vpop.xlane.xlu1 %1740 }
 0x885   :  { %v2504_v41 = vpack.c.bf16 %v2500_v59, %v2498_v38  ;;  %3556 = vrcp.f32 %v1741_v52 }
 0x887   :  { %3375 = vmatmul.mubr.msk.bf16.vlgmr.msra.gmra.mxu1 %vm120_vm0, %v2504_v41 }
 0x888   :  { %v1744_v21 = vpop.xlane.xlu1 %1743 }
 0x889   :  { %3558 = vrcp.f32 %v1744_v21 }
 0x88c   :  { %v1747_v45 = vpop.xlane.xlu0 %1746  ;;  %v2626_v23 = vpop.permute.xlu1 %2625 }
 0x88d   :  { %3560 = vrcp.f32 %v1747_v45  ;;  %3386 = vmatprep.subr.mxu1 %v2626_v23 }
 0x88e   :  { %v3555_v61 = vpop.eup %3554  ;;  %3387 = vmatpush3.msra.mxu1 %v2626_v23 }
 0x88f   :  { %v1749_v20 = vmul.f32 %v3555_v61, %v4483_v55 }
 0x890   :  { %v2624_v49 = vpop.permute.xlu0 %2623  ;;  %v2622_v63 = vpop.permute.xlu1 %2621 }
 0x891   :  { %3388 = vmatprep.subr.mxu1 %v2624_v49  ;;  %3394 = vmatprep.mubr.msk.f32.mxu1 %vm120_vm0, %v1749_v20 }
 0x892   :  { %v3557_v8 = vpop.eup %3556  ;;  %3389 = vmatpush3.msra.mxu1 %v2624_v49 }
 0x893   :  { %3390 = vmatprep.subr.mxu1 %v2622_v63  ;;  %v1751_v15 = vmul.f32 %v3557_v8, %v4487_v57 }
 0x894   :  { %3391 = vmatpush3.msra.mxu1 %v2622_v63  ;;  %v2620_v13 = vpop.permute.xlu1 %2619 }
 0x895   :  { %3392 = vmatprep.subr.mxu1 %v2620_v13 }
 0x896   :  { %v3559_v40 = vpop.eup %3558  ;;  %3393 = vmatpush3.msra.mxu1 %v2620_v13 }
 0x897   :  { %3395 = vmatmul.mubr.msk.f32.vlgmr.msra.gmra.mxu1 %vm120_vm0, %v1751_v15  ;;  %v1753_v1 = vmul.f32 %v3559_v40, %v4491_v26 }
 0x899   :  { %3397 = vmatprep.mubr.msk.f32.mxu1 %vm120_vm0, %v1753_v1 }
 0x89a   :  { %v3561_v44 = vpop.eup %3560 }
 0x89b   :  { %v1755_v3 = vmul.f32 %v3561_v44, %v4495_v53 }
 0x89d   :  { %3398 = vmatmul.mubr.msk.f32.gmra.mxu1 %vm120_vm0, %v1755_v3 }
 0x939   :  { %v3384_v48 = vpop.f32.mrf.mxu0 }
 0x93b   :  { %v2600_v12 = vpop.f32.mrf.mxu0 }
 0x93d   :  { %v3385_v6 = vpop.f32.mrf.mxu0 }
 0x93f   :  { %v2603_v11 = vpop.f32.mrf.mxu0 }
 0x947   :  { %v3376_v33 = vpop.f32.mrf.mxu1 }
 0x948   :  { %v2609_v54 = vadd.f32 %v3384_v48, %v3376_v33 }
 0x949   :  { %v2545_v5 = vpop.f32.mrf.mxu1 }
 0x94a   :  { %v2601_v24 = vadd.f32 %v2600_v12, %v2545_v5 }
 0x94b   :  { %v3377_v55 = vpop.f32.mrf.mxu1 }
 0x94c   :  { %v2612_v16 = vadd.f32 %v3385_v6, %v3377_v55 }
 0x94d   :  { %v2548_v57 = vpop.f32.mrf.mxu1 }
 0x94e   :  { %v2604_v34 = vadd.f32 %v2603_v11, %v2548_v57 }
 0x957   :  { %v3396_v29 = vpop.f32.mrf.mxu1 }
 0x958   :  { %v2715_v32 = vadd.f32 %v3396_v29, %v2604_v34 }
 0x959   :  { %v2709_v26 = vpop.f32.mrf.mxu1 }
 0x95a   :  { %v2710_v19 = vadd.f32 %v2709_v26, %v2601_v24  ;;  %2734 = vrot.lane.b32.xlu1 %v2715_v32, %s3580_s12 }
 0x95c   :  { %2732 = vrot.lane.b32.xlu0 %v2710_v19, %s3580_s12 }
 0x95d   :  { %v3399_v53 = vpop.f32.mrf.mxu1 }
 0x95e   :  { %v2725_v28 = vadd.f32 %v3399_v53, %v2612_v16 }
 0x95f   :  { %v2719_v10 = vpop.f32.mrf.mxu1 }
 0x960   :  { %v2720_v17 = vadd.f32 %v2719_v10, %v2609_v54  ;;  %2738 = vrot.lane.b32.xlu1 %v2725_v28, %s3580_s12 }
 0x962   :  { %2736 = vrot.lane.b32.xlu0 %v2720_v17, %s3580_s12 }
 0x9cc   :  { %v2735_v25 = vpop.permute.xlu1 %2734 }
 0x9cd   :  { %2746 = vst.msk [vmem:[%s4543_s8 + $0x8] sm:$0xff] %vm2744_vm2, %v2735_v25 }
 0x9ce   :  { %v2733_v14 = vpop.permute.xlu0 %2732 }
 0x9cf   :  { %2745 = vst.msk [vmem:[%s4543_s8] sm:$0xff] %vm2744_vm2, %v2733_v14 }
 0x9d2   :  { %v2739_v36 = vpop.permute.xlu1 %2738 }
 0x9d3   :  { %2748 = vst.msk [vmem:[%s4543_s8 + $0x18] sm:$0xff] %vm2744_vm2, %v2739_v36 }
 0x9d4   :  { %v2737_v9 = vpop.permute.xlu0 %2736 }
 0x9d5   :  { %2747 = vst.msk [vmem:[%s4543_s8 + $0x10] sm:$0xff] %vm2744_vm2, %v2737_v9 }

</bundles_post_ra>
